<compile_context>
chip_gen: v6e
topology: v6e:2x2x1
jax: 0.10.0
libtpu: 0.0.40
codegen_flags: <defaults>
</compile_context>

<pallas_src>
import functools
import math

import jax
import jax.numpy as jnp
from jax import lax
from jax.experimental import pallas as pl
from jax.experimental.pallas import tpu as pltpu


# ----------------------------------------------------------------------------
# Kernel
# ----------------------------------------------------------------------------
def impact_rnn_kernel(x_ref, wih_ref, whh_ref, bcomb_ref, bhn_ref,
                      w1_ref, b1_ref, w2_ref, b2_ref, w3_ref, b3_ref,
                      out_ref,
                      h_sc, gi_sc,
                      *, H, G, packed, unroll, t_total, has_tail):
    # grid = (batch_tile [parallel], time_chunk [arbitrary])
    c = pl.program_id(1)
    Tc, Bt, _Hin = x_ref.shape
    GW = gi_sc.shape[-1]                            # packed gate width

    # Initialize the hidden state at the first time chunk of each batch tile.
    @pl.when(c == 0)
    def _init():
        h_sc[...] = jnp.zeros_like(h_sc)

    # ---- Phase 1: hoisted input projection for the whole chunk (one matmul).
    x2d = x_ref[...].reshape(Tc * Bt, _Hin).astype(jnp.bfloat16)
    gi = jnp.dot(x2d, wih_ref[...], preferred_element_type=jnp.float32)
    gi = gi + bcomb_ref[...]                        # bias(z)=biz+bhz, bias(r)=..., bias(n)=bin
    gi_sc[...] = gi.reshape(Tc, Bt, GW).astype(jnp.bfloat16)

    # ---- Phase 2: sequential recurrence (only h @ W_hh on the critical path).
    whh = whh_ref[...]                              # bf16 (HW, GW)
    bhn_b = jnp.broadcast_to(bhn_ref[...], (Bt, GW))  # hoisted n-gate hh bias

    def step(t, h):
        gi_t = gi_sc[t].astype(jnp.float32)         # (Bt, GW)
        gh = jnp.dot(h.astype(jnp.bfloat16), whh,
                     preferred_element_type=jnp.float32) + bhn_b
        if packed:
            # Gate layout inside the single 128-lane tile: z|r|n at 0/H/2H.
            s = gi_t + gh
            sig = jax.nn.sigmoid(s)                 # z @ [0:H), r @ [H:2H)
            r_at_n = pltpu.roll(sig, H, axis=1)     # r -> n columns [2H:3H)
            n_full = jnp.tanh(gi_t + r_at_n * gh)   # n @ [2H:3H)
            n0 = pltpu.roll(n_full, GW - 2 * H, axis=1)   # n -> [0:H)
            h_new = (1.0 - sig) * n0 + sig * h      # z aligned with h at [0:H)
        else:
            z = jax.nn.sigmoid(gi_t[:, 0:G] + gh[:, 0:G])
            r = jax.nn.sigmoid(gi_t[:, G:2 * G] + gh[:, G:2 * G])
            n = jnp.tanh(gi_t[:, 2 * G:] + r * gh[:, 2 * G:])
            h_new = (1.0 - z) * n + z * h
        if has_tail:
            valid = (c * Tc + t) < t_total          # mask padded timesteps
            h_new = jnp.where(valid, h_new, h)
        return h_new

    h = lax.fori_loop(0, Tc, step, h_sc[...], unroll=unroll)
    h_sc[...] = h

    # ---- Phase 3: fused MLP heads (block-diagonal, lane-dense) at final step.
    @pl.when(c == pl.num_programs(1) - 1)
    def _heads():
        hb = h.astype(jnp.bfloat16)
        a1 = jnp.maximum(
            jnp.dot(hb, w1_ref[...], preferred_element_type=jnp.float32)
            + b1_ref[...], 0.0)
        a2 = jnp.maximum(
            jnp.dot(a1.astype(jnp.bfloat16), w2_ref[...],
                    preferred_element_type=jnp.float32) + b2_ref[...], 0.0)
        raw = jnp.dot(a2.astype(jnp.bfloat16), w3_ref[...],
                      preferred_element_type=jnp.float32) + b3_ref[...]
        col = lax.broadcasted_iota(jnp.int32, raw.shape, 1)
        # sigma (col 2) gets relu(.) + 1e-6; eta/mu pass through.
        out_ref[...] = jnp.where(col == 2, jnp.maximum(raw, 0.0) + 1e-6, raw)


# ----------------------------------------------------------------------------
# Parameter preparation (layout / padding / gate packing / bf16, outside kernel)
# ----------------------------------------------------------------------------
def prepare_kernel_params(p, H):
    f32, bf16 = jnp.float32, jnp.bfloat16
    D1, D2, DH = 20, 8, 128

    packed = (3 * H) <= 128
    if packed:
        G, GW, HW = H, 128, 128                     # one 128-lane gate tile
    else:
        G = ((H + 127) // 128) * 128                # per-gate 128-aligned stride
        GW, HW = 3 * G, G

    wih = p["wih"].astype(f32)                      # (H, 3H), src order (r, z, n)
    whh = p["whh"].astype(f32)
    bih = p["bih"].reshape(3 * H).astype(f32)
    bhh = p["bhh"].reshape(3 * H).astype(f32)

    # Destination gate order (z, r, n) at offsets (0, G, 2G).
    src_of_dest = (1, 0, 2)                         # src indices: r=0, z=1, n=2

    wih_p = jnp.zeros((H, GW), f32)
    whh_p = jnp.zeros((HW, GW), f32)
    bcomb = jnp.zeros((1, GW), f32)
    bhn_f = jnp.zeros((1, GW), f32)
    for g, sg in enumerate(src_of_dest):
        cdst = slice(g * G, g * G + H)
        csrc = slice(sg * H, (sg + 1) * H)
        wih_p = wih_p.at[:, cdst].set(wih[:, csrc])
        whh_p = whh_p.at[:H, cdst].set(whh[:, csrc])
        if sg == 2:                                 # n gate: keep bhh separate
            bcomb = bcomb.at[0, cdst].set(bih[csrc])
            bhn_f = bhn_f.at[0, cdst].set(bhh[csrc])
        else:
            bcomb = bcomb.at[0, cdst].set(bih[csrc] + bhh[csrc])

    # Fused heads: layer1 concat, layer2 block-diagonal, layer3 -> cols 0/1/2.
    w1f = jnp.zeros((HW, DH), f32)
    b1f = jnp.zeros((1, DH), f32)
    w2f = jnp.zeros((DH, DH), f32)
    b2f = jnp.zeros((1, DH), f32)
    w3f = jnp.zeros((DH, DH), f32)
    b3f = jnp.zeros((1, DH), f32)
    for i in range(3):                              # 0=eta, 1=mu, 2=sigma
        w1f = w1f.at[:H, i * D1:(i + 1) * D1].set(p["w1"][i].astype(f32))
        b1f = b1f.at[0, i * D1:(i + 1) * D1].set(p["b1"][i, 0].astype(f32))
        w2f = w2f.at[i * D1:(i + 1) * D1, i * D2:(i + 1) * D2].set(
            p["w2"][i].astype(f32))
        b2f = b2f.at[0, i * D2:(i + 1) * D2].set(p["b2"][i, 0].astype(f32))
        w3f = w3f.at[i * D2:(i + 1) * D2, i].set(p["w3"][i, :, 0].astype(f32))
        b3f = b3f.at[0, i].set(p["b3"][i, 0, 0].astype(f32))

    return dict(
        wih=wih_p.astype(bf16), whh=whh_p.astype(bf16),
        bcomb=bcomb, bhn=bhn_f,
        w1=w1f.astype(bf16), b1=b1f,
        w2=w2f.astype(bf16), b2=b2f,
        w3=w3f.astype(bf16), b3=b3f,
        H=H, G=G, GW=GW, HW=HW, DH=DH, packed=packed)


# ----------------------------------------------------------------------------
# Chip-generation tuning + tiling heuristics
# ----------------------------------------------------------------------------
def _chip_tuning():
    kind = ""
    try:
        kind = jax.devices()[0].device_kind.lower()
    except Exception:
        pass
    if "v7" in kind:
        # 64 MiB physical VMEM per TensorCore: keep headroom.
        return {"vmem_limit": 48 << 20, "chunk_budget": 12 << 20}
    if "v6" in kind or "v5e" in kind or "v5 lite" in kind:
        # 128 MiB physical VMEM: big chunks amortize per-grid-step overhead.
        return {"vmem_limit": 96 << 20, "chunk_budget": 20 << 20}
    # Unknown / older generations: stay near the default scoped limit.
    return {"vmem_limit": None, "chunk_budget": 8 << 20}


def _pick_time_chunk(T, Bt, H, GW, budget_bytes):
    """Largest chunk whose double-buffered x block + bf16 gi scratch fit."""
    per_step = Bt * (2 * H * 4 + GW * 2)            # 2x f32 x-block + bf16 gi
    tc = max(1, min(T, budget_bytes // max(per_step, 1)))
    return int(tc)


def _pick_batch_tile(Bp, cap=256):
    """Divisor of Bp (multiple of 8); prefers >=2 tiles once Bp >= 16 (v7x)."""
    if Bp < 16:
        return Bp
    bt = min(cap, max(8, (Bp // 2) // 8 * 8))
    while bt > 8 and Bp % bt != 0:
        bt -= 8
    return bt


# ----------------------------------------------------------------------------
# Wrapper
# ----------------------------------------------------------------------------
def impact_rnn_forward(seq, params):
    """seq: [B, T, H] float32 (batch_first, as in the PyTorch module)."""
    B, T, H = seq.shape
    kp = prepare_kernel_params(params, H)
    G, GW, HW, DH, packed = kp["G"], kp["GW"], kp["HW"], kp["DH"], kp["packed"]

    tune = _chip_tuning()
    Bp = ((B + 7) // 8) * 8                         # sublane-aligned batch
    Bt = _pick_batch_tile(Bp)
    Tc = _pick_time_chunk(T, Bt, H, GW, tune["chunk_budget"])
    n_ct = (T + Tc - 1) // Tc
    Tpad = n_ct * Tc
    has_tail = Tpad != T
    n_bt = Bp // Bt
    unroll = min(Tc, 8)

    # Single fused op: zero-pad batch/time and lay out time-major.
    # Hidden dim stays at H in HBM (no 4x padding of the input stream).
    seq_p = jnp.zeros((Tpad, Bp, H), jnp.float32).at[:T, :B, :].set(
        jnp.transpose(seq.astype(jnp.float32), (1, 0, 2)))

    def full_spec(shape):
        rank = len(shape)
        return pl.BlockSpec(shape, lambda b, c, _r=rank: (0,) * _r)

    in_specs = [
        pl.BlockSpec((Tc, Bt, H), lambda b, c: (c, b, 0)),    # seq chunk
        full_spec((H, GW)),                                   # W_ih (packed, bf16)
        full_spec((HW, GW)),                                  # W_hh (packed, bf16)
        full_spec((1, GW)),                                   # folded ih/hh bias
        full_spec((1, GW)),                                   # b_hh (n gate)
        full_spec((HW, DH)),                                  # fused head W1
        full_spec((1, DH)),                                   # fused head b1
        full_spec((DH, DH)),                                  # fused head W2
        full_spec((1, DH)),                                   # fused head b2
        full_spec((DH, DH)),                                  # fused head W3
        full_spec((1, DH)),                                   # fused head b3
    ]
    out_specs = pl.BlockSpec((Bt, DH), lambda b, c: (b, 0))
    out_shape = jax.ShapeDtypeStruct((Bp, DH), jnp.float32)

    kern = functools.partial(
        impact_rnn_kernel, H=H, G=G, packed=packed, unroll=unroll,
        t_total=T, has_tail=has_tail)

    out = pl.pallas_call(
        kern,
        out_shape=out_shape,
        grid_spec=pltpu.PrefetchScalarGridSpec(
            num_scalar_prefetch=0,
            grid=(n_bt, n_ct),
            in_specs=in_specs,
            out_specs=out_specs,
            scratch_shapes=[
                pltpu.VMEM((Bt, HW), jnp.float32),             # hidden state
                pltpu.VMEM((Tc, Bt, GW), jnp.bfloat16),        # hoisted gi chunk
            ],
        ),
        compiler_params=pltpu.CompilerParams(
            dimension_semantics=("parallel", "arbitrary"),
            vmem_limit_bytes=tune["vmem_limit"]),
    )(seq_p,
      kp["wih"], kp["whh"], kp["bcomb"], kp["bhn"],
      kp["w1"], kp["b1"], kp["w2"], kp["b2"], kp["w3"], kp["b3"])

    eta = out[:B, 0]
    mu = out[:B, 1]
    sigma = out[:B, 2]
    return eta, mu, sigma


# ----------------------------------------------------------------------------
# Pure-JAX reference (PyTorch forward semantics) + synthetic params
# ----------------------------------------------------------------------------
def reference_forward(seq, p):
    B, T, H = seq.shape
    h = jnp.zeros((B, H), jnp.float32)
    for t in range(T):
        x = seq[:, t, :]
        gi = x @ p["wih"] + p["bih"]
        gh = h @ p["whh"] + p["bhh"]
        r = jax.nn.sigmoid(gi[:, :H] + gh[:, :H])
        z = jax.nn.sigmoid(gi[:, H:2 * H] + gh[:, H:2 * H])
        n = jnp.tanh(gi[:, 2 * H:] + r * gh[:, 2 * H:])
        h = (1.0 - z) * n + z * h

    def head(i):
        a = jnp.maximum(h @ p["w1"][i] + p["b1"][i], 0.0)
        a = jnp.maximum(a @ p["w2"][i] + p["b2"][i], 0.0)
        return a @ p["w3"][i] + p["b3"][i]

    eta = head(0)[:, 0]
    mu = head(1)[:, 0]
    sigma = jnp.maximum(head(2), 0.0)[:, 0] + 1e-6
    return eta, mu, sigma


def init_params(key, hidden_dim):
    """Deterministic synthetic parameters (shapes from ImpactRNN.__init__)."""
    H = hidden_dim
    ks = jax.random.split(key, 10)
    u = lambda k, shape, s: jax.random.uniform(k, shape, jnp.float32, -s, s)
    s_gru = 1.0 / math.sqrt(H)
    return {
        # GRU weights, already transposed: x @ wih, gate order (r, z, n)
        "wih": u(ks[0], (H, 3 * H), s_gru),
        "whh": u(ks[1], (H, 3 * H), s_gru),
        "bih": u(ks[2], (1, 3 * H), s_gru),
        "bhh": u(ks[3], (1, 3 * H), s_gru),
        # Three stacked heads (eta, mu, sigma): H -> 20 -> 8 -> 1
        "w1": u(ks[4], (3, H, 20), 1.0 / math.sqrt(H)),
        "b1": u(ks[5], (3, 1, 20), 1.0 / math.sqrt(H)),
        "w2": u(ks[6], (3, 20, 8), 1.0 / math.sqrt(20)),
        "b2": u(ks[7], (3, 1, 8), 1.0 / math.sqrt(20)),
        "w3": u(ks[8], (3, 8, 1), 1.0 / math.sqrt(8)),
        "b3": u(ks[9], (3, 1, 1), 1.0 / math.sqrt(8)),
        # TODO(synk): `alpha` buffer / predict_cumulative() are not part of
        # forward(); not implemented as a kernel here.
    }


if __name__ == "__main__":
    B, T, H = 2, 8, 32
    key = jax.random.PRNGKey(0)
    k_seq, k_par = jax.random.split(key)
    seq = jax.random.normal(k_seq, (B, T, H), jnp.float32)
    params = init_params(k_par, H)

    eta, mu, sigma = impact_rnn_forward(seq, params)
    jax.block_until_ready((eta, mu, sigma))

    eta_ref, mu_ref, sigma_ref = reference_forward(seq, params)
    assert eta.shape == (B,) and mu.shape == (B,) and sigma.shape == (B,)
    # bf16 MXU path -> slightly looser tolerance than the pure-f32 reference.
    assert jnp.allclose(eta, eta_ref, atol=2e-2, rtol=2e-2), (eta, eta_ref)
    assert jnp.allclose(mu, mu_ref, atol=2e-2, rtol=2e-2), (mu, mu_ref)
    assert jnp.allclose(sigma, sigma_ref, atol=2e-2, rtol=2e-2), (sigma, sigma_ref)

    print("KERNEL_OK")
</pallas_src>

<mosaic_0001>
module attributes {stable_mosaic.version = 11 : i64} {
  func.func @impact_rnn_kernel(%arg0: i32, %arg1: i32, %arg2: memref<8x8x32xf32, #tpu.memory_space<vmem>>, %arg3: memref<32x128xbf16, #tpu.memory_space<vmem>>, %arg4: memref<128x128xbf16, #tpu.memory_space<vmem>>, %arg5: memref<1x128xf32, #tpu.memory_space<vmem>>, %arg6: memref<1x128xf32, #tpu.memory_space<vmem>>, %arg7: memref<128x128xbf16, #tpu.memory_space<vmem>>, %arg8: memref<1x128xf32, #tpu.memory_space<vmem>>, %arg9: memref<128x128xbf16, #tpu.memory_space<vmem>>, %arg10: memref<1x128xf32, #tpu.memory_space<vmem>>, %arg11: memref<128x128xbf16, #tpu.memory_space<vmem>>, %arg12: memref<1x128xf32, #tpu.memory_space<vmem>>, %arg13: memref<8x128xf32, #tpu.memory_space<vmem>>, %arg14: memref<8x128xf32, #tpu.memory_space<vmem>>, %arg15: memref<8x8x128xbf16, #tpu.memory_space<vmem>>) attributes {dimension_semantics = [#tpu.dimension_semantics<parallel>, #tpu.dimension_semantics<arbitrary>], iteration_bounds = array<i64: 1, 1>, scalar_prefetch = 0 : i64, scratch_operands = 2 : i64, tpu.core_type = #tpu.core_type<tc>, window_params = [{transform_indices = @transform_0, window_bounds = array<i64: 8, 8, 32>}, {pipeline_mode = #tpu.pipeline_mode<synchronous>, transform_indices = @transform_1, window_bounds = array<i64: 32, 128>}, {pipeline_mode = #tpu.pipeline_mode<synchronous>, transform_indices = @transform_2, window_bounds = array<i64: 128, 128>}, {pipeline_mode = #tpu.pipeline_mode<synchronous>, transform_indices = @transform_3, window_bounds = array<i64: 1, 128>}, {pipeline_mode = #tpu.pipeline_mode<synchronous>, transform_indices = @transform_4, window_bounds = array<i64: 1, 128>}, {pipeline_mode = #tpu.pipeline_mode<synchronous>, transform_indices = @transform_5, window_bounds = array<i64: 128, 128>}, {pipeline_mode = #tpu.pipeline_mode<synchronous>, transform_indices = @transform_6, window_bounds = array<i64: 1, 128>}, {pipeline_mode = #tpu.pipeline_mode<synchronous>, transform_indices = @transform_7, window_bounds = array<i64: 128, 128>}, {pipeline_mode = #tpu.pipeline_mode<synchronous>, transform_indices = @transform_8, window_bounds = array<i64: 1, 128>}, {pipeline_mode = #tpu.pipeline_mode<synchronous>, transform_indices = @transform_9, window_bounds = array<i64: 128, 128>}, {pipeline_mode = #tpu.pipeline_mode<synchronous>, transform_indices = @transform_10, window_bounds = array<i64: 1, 128>}, {transform_indices = @transform_11, window_bounds = array<i64: 8, 128>}]} {
    %c0_i32 = arith.constant 0 : i32
    %0 = arith.cmpi eq, %arg1, %c0_i32 : i32
    %1 = arith.extui %0 : i1 to i32
    %c0_i32_0 = arith.constant 0 : i32
    %2 = arith.cmpi ne, %1, %c0_i32_0 : i32
    scf.if %2 {
      %cst_75 = arith.constant 0.000000e+00 : f32
      %207 = vector.broadcast %cst_75 : f32 to vector<8x128xf32>
      %c0_76 = arith.constant 0 : index
      %c0_77 = arith.constant 0 : index
      %208 = vector.load %arg14[%c0_76, %c0_77] : memref<8x128xf32, #tpu.memory_space<vmem>>, vector<8x128xf32>
      tpu.vector_store %arg14[%c0_76, %c0_77], %207 {strides = array<i32>} : memref<8x128xf32, #tpu.memory_space<vmem>>, vector<8x128xf32>,
    } else {
    }
    %c0 = arith.constant 0 : index
    %c0_1 = arith.constant 0 : index
    %c0_2 = arith.constant 0 : index
    %3 = vector.load %arg2[%c0, %c0_1, %c0_2] : memref<8x8x32xf32, #tpu.memory_space<vmem>>, vector<8x8x32xf32>
    %4 = vector.shape_cast %3 : vector<8x8x32xf32> to vector<64x32xf32>
    %5 = arith.truncf %4 : vector<64x32xf32> to vector<64x32xbf16>
    %c0_3 = arith.constant 0 : index
    %c0_4 = arith.constant 0 : index
    %6 = vector.load %arg3[%c0_3, %c0_4] : memref<32x128xbf16, #tpu.memory_space<vmem>>, vector<32x128xbf16>
    %cst = arith.constant dense<0.000000e+00> : vector<64x128xf32>
    %7 = tpu.matmul %5, %6, %cst {dimension_numbers = #tpu.dot_dimension_numbers<[1], [0], [0], [1], [0, 0, 1, 1], [], []>} : vector<64x32xbf16>, vector<32x128xbf16>, vector<64x128xf32> -> vector<64x128xf32>
    %c0_5 = arith.constant 0 : index
    %c0_6 = arith.constant 0 : index
    %8 = vector.load %arg5[%c0_5, %c0_6] : memref<1x128xf32, #tpu.memory_space<vmem>>, vector<1x128xf32>
    %9 = vector.broadcast %8 : vector<1x128xf32> to vector<64x128xf32>
    %10 = arith.addf %7, %9 : vector<64x128xf32>
    %11 = vector.shape_cast %10 : vector<64x128xf32> to vector<8x8x128xf32>
    %12 = arith.truncf %11 : vector<8x8x128xf32> to vector<8x8x128xbf16>
    %c0_7 = arith.constant 0 : index
    %c0_8 = arith.constant 0 : index
    %c0_9 = arith.constant 0 : index
    %13 = vector.load %arg15[%c0_7, %c0_8, %c0_9] : memref<8x8x128xbf16, #tpu.memory_space<vmem>>, vector<8x8x128xbf16>
    tpu.vector_store %arg15[%c0_7, %c0_8, %c0_9], %12 {strides = array<i32>} : memref<8x8x128xbf16, #tpu.memory_space<vmem>>, vector<8x8x128xbf16>,
    %c0_10 = arith.constant 0 : index
    %c0_11 = arith.constant 0 : index
    %14 = vector.load %arg4[%c0_10, %c0_11] : memref<128x128xbf16, #tpu.memory_space<vmem>>, vector<128x128xbf16>
    %c0_12 = arith.constant 0 : index
    %c0_13 = arith.constant 0 : index
    %15 = vector.load %arg6[%c0_12, %c0_13] : memref<1x128xf32, #tpu.memory_space<vmem>>, vector<1x128xf32>
    %16 = vector.shape_cast %15 : vector<1x128xf32> to vector<1x128xf32>
    %17 = vector.broadcast %16 : vector<1x128xf32> to vector<8x128xf32>
    %c0_14 = arith.constant 0 : index
    %c0_15 = arith.constant 0 : index
    %18 = vector.load %arg14[%c0_14, %c0_15] : memref<8x128xf32, #tpu.memory_space<vmem>>, vector<8x128xf32>
    %c0_i32_16 = arith.constant 0 : i32
    %19 = arith.index_cast %c0_i32_16 : i32 to index
    %c0_17 = arith.constant 0 : index
    %c0_18 = arith.constant 0 : index
    %20 = vector.load %arg15[%19, %c0_17, %c0_18] : memref<8x8x128xbf16, #tpu.memory_space<vmem>>, vector<1x8x128xbf16>
    %21 = vector.shape_cast %20 : vector<1x8x128xbf16> to vector<8x128xbf16>
    %22 = arith.extf %21 : vector<8x128xbf16> to vector<8x128xf32>
    %23 = arith.truncf %18 : vector<8x128xf32> to vector<8x128xbf16>
    %cst_19 = arith.constant dense<0.000000e+00> : vector<8x128xf32>
    %24 = tpu.matmul %23, %14, %cst_19 {dimension_numbers = #tpu.dot_dimension_numbers<[1], [0], [0], [1], [0, 0, 1, 1], [], []>} : vector<8x128xbf16>, vector<128x128xbf16>, vector<8x128xf32> -> vector<8x128xf32>
    %25 = arith.addf %24, %17 : vector<8x128xf32>
    %26 = arith.addf %22, %25 : vector<8x128xf32>
    %27 = arith.negf %26 : vector<8x128xf32>
    %28 = math.exp %27 : vector<8x128xf32>
    %cst_20 = arith.constant 1.000000e+00 : f32
    %29 = vector.broadcast %cst_20 : f32 to vector<8x128xf32>
    %30 = arith.addf %29, %28 : vector<8x128xf32>
    %31 = arith.divf %29, %30 : vector<8x128xf32>
    %c32_i32 = arith.constant 32 : i32
    %32 = tpu.dynamic_rotate %31 by %c32_i32 dim 1 : vector<8x128xf32>, i32 -> vector<8x128xf32>
    %33 = arith.mulf %32, %25 : vector<8x128xf32>
    %34 = arith.addf %22, %33 : vector<8x128xf32>
    %35 = math.tanh %34 : vector<8x128xf32>
    %c64_i32 = arith.constant 64 : i32
    %36 = tpu.dynamic_rotate %35 by %c64_i32 dim 1 : vector<8x128xf32>, i32 -> vector<8x128xf32>
    %cst_21 = arith.constant 1.000000e+00 : f32
    %37 = vector.broadcast %cst_21 : f32 to vector<8x128xf32>
    %38 = arith.subf %37, %31 : vector<8x128xf32>
    %39 = arith.mulf %38, %36 : vector<8x128xf32>
    %40 = arith.mulf %31, %18 : vector<8x128xf32>
    %41 = arith.addf %39, %40 : vector<8x128xf32>
    %c1_i32 = arith.constant 1 : i32
    %42 = arith.index_cast %c1_i32 : i32 to index
    %c0_22 = arith.constant 0 : index
    %c0_23 = arith.constant 0 : index
    %43 = vector.load %arg15[%42, %c0_22, %c0_23] : memref<8x8x128xbf16, #tpu.memory_space<vmem>>, vector<1x8x128xbf16>
    %44 = vector.shape_cast %43 : vector<1x8x128xbf16> to vector<8x128xbf16>
    %45 = arith.extf %44 : vector<8x128xbf16> to vector<8x128xf32>
    %46 = arith.truncf %41 : vector<8x128xf32> to vector<8x128xbf16>
    %cst_24 = arith.constant dense<0.000000e+00> : vector<8x128xf32>
    %47 = tpu.matmul %46, %14, %cst_24 {dimension_numbers = #tpu.dot_dimension_numbers<[1], [0], [0], [1], [0, 0, 1, 1], [], []>} : vector<8x128xbf16>, vector<128x128xbf16>, vector<8x128xf32> -> vector<8x128xf32>
    %48 = arith.addf %47, %17 : vector<8x128xf32>
    %49 = arith.addf %45, %48 : vector<8x128xf32>
    %50 = arith.negf %49 : vector<8x128xf32>
    %51 = math.exp %50 : vector<8x128xf32>
    %cst_25 = arith.constant 1.000000e+00 : f32
    %52 = vector.broadcast %cst_25 : f32 to vector<8x128xf32>
    %53 = arith.addf %52, %51 : vector<8x128xf32>
    %54 = arith.divf %52, %53 : vector<8x128xf32>
    %c32_i32_26 = arith.constant 32 : i32
    %55 = tpu.dynamic_rotate %54 by %c32_i32_26 dim 1 : vector<8x128xf32>, i32 -> vector<8x128xf32>
    %56 = arith.mulf %55, %48 : vector<8x128xf32>
    %57 = arith.addf %45, %56 : vector<8x128xf32>
    %58 = math.tanh %57 : vector<8x128xf32>
    %c64_i32_27 = arith.constant 64 : i32
    %59 = tpu.dynamic_rotate %58 by %c64_i32_27 dim 1 : vector<8x128xf32>, i32 -> vector<8x128xf32>
    %cst_28 = arith.constant 1.000000e+00 : f32
    %60 = vector.broadcast %cst_28 : f32 to vector<8x128xf32>
    %61 = arith.subf %60, %54 : vector<8x128xf32>
    %62 = arith.mulf %61, %59 : vector<8x128xf32>
    %63 = arith.mulf %54, %41 : vector<8x128xf32>
    %64 = arith.addf %62, %63 : vector<8x128xf32>
    %c2_i32 = arith.constant 2 : i32
    %65 = arith.index_cast %c2_i32 : i32 to index
    %c0_29 = arith.constant 0 : index
    %c0_30 = arith.constant 0 : index
    %66 = vector.load %arg15[%65, %c0_29, %c0_30] : memref<8x8x128xbf16, #tpu.memory_space<vmem>>, vector<1x8x128xbf16>
    %67 = vector.shape_cast %66 : vector<1x8x128xbf16> to vector<8x128xbf16>
    %68 = arith.extf %67 : vector<8x128xbf16> to vector<8x128xf32>
    %69 = arith.truncf %64 : vector<8x128xf32> to vector<8x128xbf16>
    %cst_31 = arith.constant dense<0.000000e+00> : vector<8x128xf32>
    %70 = tpu.matmul %69, %14, %cst_31 {dimension_numbers = #tpu.dot_dimension_numbers<[1], [0], [0], [1], [0, 0, 1, 1], [], []>} : vector<8x128xbf16>, vector<128x128xbf16>, vector<8x128xf32> -> vector<8x128xf32>
    %71 = arith.addf %70, %17 : vector<8x128xf32>
    %72 = arith.addf %68, %71 : vector<8x128xf32>
    %73 = arith.negf %72 : vector<8x128xf32>
    %74 = math.exp %73 : vector<8x128xf32>
    %cst_32 = arith.constant 1.000000e+00 : f32
    %75 = vector.broadcast %cst_32 : f32 to vector<8x128xf32>
    %76 = arith.addf %75, %74 : vector<8x128xf32>
    %77 = arith.divf %75, %76 : vector<8x128xf32>
    %c32_i32_33 = arith.constant 32 : i32
    %78 = tpu.dynamic_rotate %77 by %c32_i32_33 dim 1 : vector<8x128xf32>, i32 -> vector<8x128xf32>
    %79 = arith.mulf %78, %71 : vector<8x128xf32>
    %80 = arith.addf %68, %79 : vector<8x128xf32>
    %81 = math.tanh %80 : vector<8x128xf32>
    %c64_i32_34 = arith.constant 64 : i32
    %82 = tpu.dynamic_rotate %81 by %c64_i32_34 dim 1 : vector<8x128xf32>, i32 -> vector<8x128xf32>
    %cst_35 = arith.constant 1.000000e+00 : f32
    %83 = vector.broadcast %cst_35 : f32 to vector<8x128xf32>
    %84 = arith.subf %83, %77 : vector<8x128xf32>
    %85 = arith.mulf %84, %82 : vector<8x128xf32>
    %86 = arith.mulf %77, %64 : vector<8x128xf32>
    %87 = arith.addf %85, %86 : vector<8x128xf32>
    %c3_i32 = arith.constant 3 : i32
    %88 = arith.index_cast %c3_i32 : i32 to index
    %c0_36 = arith.constant 0 : index
    %c0_37 = arith.constant 0 : index
    %89 = vector.load %arg15[%88, %c0_36, %c0_37] : memref<8x8x128xbf16, #tpu.memory_space<vmem>>, vector<1x8x128xbf16>
    %90 = vector.shape_cast %89 : vector<1x8x128xbf16> to vector<8x128xbf16>
    %91 = arith.extf %90 : vector<8x128xbf16> to vector<8x128xf32>
    %92 = arith.truncf %87 : vector<8x128xf32> to vector<8x128xbf16>
    %cst_38 = arith.constant dense<0.000000e+00> : vector<8x128xf32>
    %93 = tpu.matmul %92, %14, %cst_38 {dimension_numbers = #tpu.dot_dimension_numbers<[1], [0], [0], [1], [0, 0, 1, 1], [], []>} : vector<8x128xbf16>, vector<128x128xbf16>, vector<8x128xf32> -> vector<8x128xf32>
    %94 = arith.addf %93, %17 : vector<8x128xf32>
    %95 = arith.addf %91, %94 : vector<8x128xf32>
    %96 = arith.negf %95 : vector<8x128xf32>
    %97 = math.exp %96 : vector<8x128xf32>
    %cst_39 = arith.constant 1.000000e+00 : f32
    %98 = vector.broadcast %cst_39 : f32 to vector<8x128xf32>
    %99 = arith.addf %98, %97 : vector<8x128xf32>
    %100 = arith.divf %98, %99 : vector<8x128xf32>
    %c32_i32_40 = arith.constant 32 : i32
    %101 = tpu.dynamic_rotate %100 by %c32_i32_40 dim 1 : vector<8x128xf32>, i32 -> vector<8x128xf32>
    %102 = arith.mulf %101, %94 : vector<8x128xf32>
    %103 = arith.addf %91, %102 : vector<8x128xf32>
    %104 = math.tanh %103 : vector<8x128xf32>
    %c64_i32_41 = arith.constant 64 : i32
    %105 = tpu.dynamic_rotate %104 by %c64_i32_41 dim 1 : vector<8x128xf32>, i32 -> vector<8x128xf32>
    %cst_42 = arith.constant 1.000000e+00 : f32
    %106 = vector.broadcast %cst_42 : f32 to vector<8x128xf32>
    %107 = arith.subf %106, %100 : vector<8x128xf32>
    %108 = arith.mulf %107, %105 : vector<8x128xf32>
    %109 = arith.mulf %100, %87 : vector<8x128xf32>
    %110 = arith.addf %108, %109 : vector<8x128xf32>
    %c4_i32 = arith.constant 4 : i32
    %111 = arith.index_cast %c4_i32 : i32 to index
    %c0_43 = arith.constant 0 : index
    %c0_44 = arith.constant 0 : index
    %112 = vector.load %arg15[%111, %c0_43, %c0_44] : memref<8x8x128xbf16, #tpu.memory_space<vmem>>, vector<1x8x128xbf16>
    %113 = vector.shape_cast %112 : vector<1x8x128xbf16> to vector<8x128xbf16>
    %114 = arith.extf %113 : vector<8x128xbf16> to vector<8x128xf32>
    %115 = arith.truncf %110 : vector<8x128xf32> to vector<8x128xbf16>
    %cst_45 = arith.constant dense<0.000000e+00> : vector<8x128xf32>
    %116 = tpu.matmul %115, %14, %cst_45 {dimension_numbers = #tpu.dot_dimension_numbers<[1], [0], [0], [1], [0, 0, 1, 1], [], []>} : vector<8x128xbf16>, vector<128x128xbf16>, vector<8x128xf32> -> vector<8x128xf32>
    %117 = arith.addf %116, %17 : vector<8x128xf32>
    %118 = arith.addf %114, %117 : vector<8x128xf32>
    %119 = arith.negf %118 : vector<8x128xf32>
    %120 = math.exp %119 : vector<8x128xf32>
    %cst_46 = arith.constant 1.000000e+00 : f32
    %121 = vector.broadcast %cst_46 : f32 to vector<8x128xf32>
    %122 = arith.addf %121, %120 : vector<8x128xf32>
    %123 = arith.divf %121, %122 : vector<8x128xf32>
    %c32_i32_47 = arith.constant 32 : i32
    %124 = tpu.dynamic_rotate %123 by %c32_i32_47 dim 1 : vector<8x128xf32>, i32 -> vector<8x128xf32>
    %125 = arith.mulf %124, %117 : vector<8x128xf32>
    %126 = arith.addf %114, %125 : vector<8x128xf32>
    %127 = math.tanh %126 : vector<8x128xf32>
    %c64_i32_48 = arith.constant 64 : i32
    %128 = tpu.dynamic_rotate %127 by %c64_i32_48 dim 1 : vector<8x128xf32>, i32 -> vector<8x128xf32>
    %cst_49 = arith.constant 1.000000e+00 : f32
    %129 = vector.broadcast %cst_49 : f32 to vector<8x128xf32>
    %130 = arith.subf %129, %123 : vector<8x128xf32>
    %131 = arith.mulf %130, %128 : vector<8x128xf32>
    %132 = arith.mulf %123, %110 : vector<8x128xf32>
    %133 = arith.addf %131, %132 : vector<8x128xf32>
    %c5_i32 = arith.constant 5 : i32
    %134 = arith.index_cast %c5_i32 : i32 to index
    %c0_50 = arith.constant 0 : index
    %c0_51 = arith.constant 0 : index
    %135 = vector.load %arg15[%134, %c0_50, %c0_51] : memref<8x8x128xbf16, #tpu.memory_space<vmem>>, vector<1x8x128xbf16>
    %136 = vector.shape_cast %135 : vector<1x8x128xbf16> to vector<8x128xbf16>
    %137 = arith.extf %136 : vector<8x128xbf16> to vector<8x128xf32>
    %138 = arith.truncf %133 : vector<8x128xf32> to vector<8x128xbf16>
    %cst_52 = arith.constant dense<0.000000e+00> : vector<8x128xf32>
    %139 = tpu.matmul %138, %14, %cst_52 {dimension_numbers = #tpu.dot_dimension_numbers<[1], [0], [0], [1], [0, 0, 1, 1], [], []>} : vector<8x128xbf16>, vector<128x128xbf16>, vector<8x128xf32> -> vector<8x128xf32>
    %140 = arith.addf %139, %17 : vector<8x128xf32>
    %141 = arith.addf %137, %140 : vector<8x128xf32>
    %142 = arith.negf %141 : vector<8x128xf32>
    %143 = math.exp %142 : vector<8x128xf32>
    %cst_53 = arith.constant 1.000000e+00 : f32
    %144 = vector.broadcast %cst_53 : f32 to vector<8x128xf32>
    %145 = arith.addf %144, %143 : vector<8x128xf32>
    %146 = arith.divf %144, %145 : vector<8x128xf32>
    %c32_i32_54 = arith.constant 32 : i32
    %147 = tpu.dynamic_rotate %146 by %c32_i32_54 dim 1 : vector<8x128xf32>, i32 -> vector<8x128xf32>
    %148 = arith.mulf %147, %140 : vector<8x128xf32>
    %149 = arith.addf %137, %148 : vector<8x128xf32>
    %150 = math.tanh %149 : vector<8x128xf32>
    %c64_i32_55 = arith.constant 64 : i32
    %151 = tpu.dynamic_rotate %150 by %c64_i32_55 dim 1 : vector<8x128xf32>, i32 -> vector<8x128xf32>
    %cst_56 = arith.constant 1.000000e+00 : f32
    %152 = vector.broadcast %cst_56 : f32 to vector<8x128xf32>
    %153 = arith.subf %152, %146 : vector<8x128xf32>
    %154 = arith.mulf %153, %151 : vector<8x128xf32>
    %155 = arith.mulf %146, %133 : vector<8x128xf32>
    %156 = arith.addf %154, %155 : vector<8x128xf32>
    %c6_i32 = arith.constant 6 : i32
    %157 = arith.index_cast %c6_i32 : i32 to index
    %c0_57 = arith.constant 0 : index
    %c0_58 = arith.constant 0 : index
    %158 = vector.load %arg15[%157, %c0_57, %c0_58] : memref<8x8x128xbf16, #tpu.memory_space<vmem>>, vector<1x8x128xbf16>
    %159 = vector.shape_cast %158 : vector<1x8x128xbf16> to vector<8x128xbf16>
    %160 = arith.extf %159 : vector<8x128xbf16> to vector<8x128xf32>
    %161 = arith.truncf %156 : vector<8x128xf32> to vector<8x128xbf16>
    %cst_59 = arith.constant dense<0.000000e+00> : vector<8x128xf32>
    %162 = tpu.matmul %161, %14, %cst_59 {dimension_numbers = #tpu.dot_dimension_numbers<[1], [0], [0], [1], [0, 0, 1, 1], [], []>} : vector<8x128xbf16>, vector<128x128xbf16>, vector<8x128xf32> -> vector<8x128xf32>
    %163 = arith.addf %162, %17 : vector<8x128xf32>
    %164 = arith.addf %160, %163 : vector<8x128xf32>
    %165 = arith.negf %164 : vector<8x128xf32>
    %166 = math.exp %165 : vector<8x128xf32>
    %cst_60 = arith.constant 1.000000e+00 : f32
    %167 = vector.broadcast %cst_60 : f32 to vector<8x128xf32>
    %168 = arith.addf %167, %166 : vector<8x128xf32>
    %169 = arith.divf %167, %168 : vector<8x128xf32>
    %c32_i32_61 = arith.constant 32 : i32
    %170 = tpu.dynamic_rotate %169 by %c32_i32_61 dim 1 : vector<8x128xf32>, i32 -> vector<8x128xf32>
    %171 = arith.mulf %170, %163 : vector<8x128xf32>
    %172 = arith.addf %160, %171 : vector<8x128xf32>
    %173 = math.tanh %172 : vector<8x128xf32>
    %c64_i32_62 = arith.constant 64 : i32
    %174 = tpu.dynamic_rotate %173 by %c64_i32_62 dim 1 : vector<8x128xf32>, i32 -> vector<8x128xf32>
    %cst_63 = arith.constant 1.000000e+00 : f32
    %175 = vector.broadcast %cst_63 : f32 to vector<8x128xf32>
    %176 = arith.subf %175, %169 : vector<8x128xf32>
    %177 = arith.mulf %176, %174 : vector<8x128xf32>
    %178 = arith.mulf %169, %156 : vector<8x128xf32>
    %179 = arith.addf %177, %178 : vector<8x128xf32>
    %c7_i32 = arith.constant 7 : i32
    %180 = arith.index_cast %c7_i32 : i32 to index
    %c0_64 = arith.constant 0 : index
    %c0_65 = arith.constant 0 : index
    %181 = vector.load %arg15[%180, %c0_64, %c0_65] : memref<8x8x128xbf16, #tpu.memory_space<vmem>>, vector<1x8x128xbf16>
    %182 = vector.shape_cast %181 : vector<1x8x128xbf16> to vector<8x128xbf16>
    %183 = arith.extf %182 : vector<8x128xbf16> to vector<8x128xf32>
    %184 = arith.truncf %179 : vector<8x128xf32> to vector<8x128xbf16>
    %cst_66 = arith.constant dense<0.000000e+00> : vector<8x128xf32>
    %185 = tpu.matmul %184, %14, %cst_66 {dimension_numbers = #tpu.dot_dimension_numbers<[1], [0], [0], [1], [0, 0, 1, 1], [], []>} : vector<8x128xbf16>, vector<128x128xbf16>, vector<8x128xf32> -> vector<8x128xf32>
    %186 = arith.addf %185, %17 : vector<8x128xf32>
    %187 = arith.addf %183, %186 : vector<8x128xf32>
    %188 = arith.negf %187 : vector<8x128xf32>
    %189 = math.exp %188 : vector<8x128xf32>
    %cst_67 = arith.constant 1.000000e+00 : f32
    %190 = vector.broadcast %cst_67 : f32 to vector<8x128xf32>
    %191 = arith.addf %190, %189 : vector<8x128xf32>
    %192 = arith.divf %190, %191 : vector<8x128xf32>
    %c32_i32_68 = arith.constant 32 : i32
    %193 = tpu.dynamic_rotate %192 by %c32_i32_68 dim 1 : vector<8x128xf32>, i32 -> vector<8x128xf32>
    %194 = arith.mulf %193, %186 : vector<8x128xf32>
    %195 = arith.addf %183, %194 : vector<8x128xf32>
    %196 = math.tanh %195 : vector<8x128xf32>
    %c64_i32_69 = arith.constant 64 : i32
    %197 = tpu.dynamic_rotate %196 by %c64_i32_69 dim 1 : vector<8x128xf32>, i32 -> vector<8x128xf32>
    %cst_70 = arith.constant 1.000000e+00 : f32
    %198 = vector.broadcast %cst_70 : f32 to vector<8x128xf32>
    %199 = arith.subf %198, %192 : vector<8x128xf32>
    %200 = arith.mulf %199, %197 : vector<8x128xf32>
    %201 = arith.mulf %192, %179 : vector<8x128xf32>
    %202 = arith.addf %200, %201 : vector<8x128xf32>
    %c8_i32 = arith.constant 8 : i32
    %c0_71 = arith.constant 0 : index
    %c0_72 = arith.constant 0 : index
    %203 = vector.load %arg14[%c0_71, %c0_72] : memref<8x128xf32, #tpu.memory_space<vmem>>, vector<8x128xf32>
    tpu.vector_store %arg14[%c0_71, %c0_72], %202 {strides = array<i32>} : memref<8x128xf32, #tpu.memory_space<vmem>>, vector<8x128xf32>,
    %c0_i32_73 = arith.constant 0 : i32
    %204 = arith.cmpi eq, %arg1, %c0_i32_73 : i32
    %205 = arith.extui %204 : i1 to i32
    %c0_i32_74 = arith.constant 0 : i32
    %206 = arith.cmpi ne, %205, %c0_i32_74 : i32
    scf.if %206 {
      %207 = arith.truncf %202 : vector<8x128xf32> to vector<8x128xbf16>
      %c0_75 = arith.constant 0 : index
      %c0_76 = arith.constant 0 : index
      %208 = vector.load %arg7[%c0_75, %c0_76] : memref<128x128xbf16, #tpu.memory_space<vmem>>, vector<128x128xbf16>
      %cst_77 = arith.constant dense<0.000000e+00> : vector<8x128xf32>
      %209 = tpu.matmul %207, %208, %cst_77 {dimension_numbers = #tpu.dot_dimension_numbers<[1], [0], [0], [1], [0, 0, 1, 1], [], []>} : vector<8x128xbf16>, vector<128x128xbf16>, vector<8x128xf32> -> vector<8x128xf32>
      %c0_78 = arith.constant 0 : index
      %c0_79 = arith.constant 0 : index
      %210 = vector.load %arg8[%c0_78, %c0_79] : memref<1x128xf32, #tpu.memory_space<vmem>>, vector<1x128xf32>
      %211 = vector.broadcast %210 : vector<1x128xf32> to vector<8x128xf32>
      %212 = arith.addf %209, %211 : vector<8x128xf32>
      %cst_80 = arith.constant 0.000000e+00 : f32
      %213 = vector.broadcast %cst_80 : f32 to vector<8x128xf32>
      %214 = arith.maximumf %212, %213 : vector<8x128xf32>
      %215 = arith.truncf %214 : vector<8x128xf32> to vector<8x128xbf16>
      %c0_81 = arith.constant 0 : index
      %c0_82 = arith.constant 0 : index
      %216 = vector.load %arg9[%c0_81, %c0_82] : memref<128x128xbf16, #tpu.memory_space<vmem>>, vector<128x128xbf16>
      %cst_83 = arith.constant dense<0.000000e+00> : vector<8x128xf32>
      %217 = tpu.matmul %215, %216, %cst_83 {dimension_numbers = #tpu.dot_dimension_numbers<[1], [0], [0], [1], [0, 0, 1, 1], [], []>} : vector<8x128xbf16>, vector<128x128xbf16>, vector<8x128xf32> -> vector<8x128xf32>
      %c0_84 = arith.constant 0 : index
      %c0_85 = arith.constant 0 : index
      %218 = vector.load %arg10[%c0_84, %c0_85] : memref<1x128xf32, #tpu.memory_space<vmem>>, vector<1x128xf32>
      %219 = vector.broadcast %218 : vector<1x128xf32> to vector<8x128xf32>
      %220 = arith.addf %217, %219 : vector<8x128xf32>
      %cst_86 = arith.constant 0.000000e+00 : f32
      %221 = vector.broadcast %cst_86 : f32 to vector<8x128xf32>
      %222 = arith.maximumf %220, %221 : vector<8x128xf32>
      %223 = arith.truncf %222 : vector<8x128xf32> to vector<8x128xbf16>
      %c0_87 = arith.constant 0 : index
      %c0_88 = arith.constant 0 : index
      %224 = vector.load %arg11[%c0_87, %c0_88] : memref<128x128xbf16, #tpu.memory_space<vmem>>, vector<128x128xbf16>
      %cst_89 = arith.constant dense<0.000000e+00> : vector<8x128xf32>
      %225 = tpu.matmul %223, %224, %cst_89 {dimension_numbers = #tpu.dot_dimension_numbers<[1], [0], [0], [1], [0, 0, 1, 1], [], []>} : vector<8x128xbf16>, vector<128x128xbf16>, vector<8x128xf32> -> vector<8x128xf32>
      %c0_90 = arith.constant 0 : index
      %c0_91 = arith.constant 0 : index
      %226 = vector.load %arg12[%c0_90, %c0_91] : memref<1x128xf32, #tpu.memory_space<vmem>>, vector<1x128xf32>
      %227 = vector.broadcast %226 : vector<1x128xf32> to vector<8x128xf32>
      %228 = arith.addf %225, %227 : vector<8x128xf32>
      %229 = tpu.iota {dimensions = array<i32: 1>} : vector<8x128xi32>
      %c2_i32_92 = arith.constant 2 : i32
      %230 = vector.broadcast %c2_i32_92 : i32 to vector<8x128xi32>
      %231 = arith.cmpi eq, %229, %230 : vector<8x128xi32>
      %cst_93 = arith.constant 0.000000e+00 : f32
      %232 = vector.broadcast %cst_93 : f32 to vector<8x128xf32>
      %233 = arith.maximumf %228, %232 : vector<8x128xf32>
      %cst_94 = arith.constant 9.99999997E-7 : f32
      %234 = vector.broadcast %cst_94 : f32 to vector<8x128xf32>
      %235 = arith.addf %233, %234 : vector<8x128xf32>
      %236 = arith.select %231, %235, %228 : vector<8x128xi1>, vector<8x128xf32>
      %c0_95 = arith.constant 0 : index
      %c0_96 = arith.constant 0 : index
      %237 = vector.load %arg13[%c0_95, %c0_96] : memref<8x128xf32, #tpu.memory_space<vmem>>, vector<8x128xf32>
      tpu.vector_store %arg13[%c0_95, %c0_96], %236 {strides = array<i32>} : memref<8x128xf32, #tpu.memory_space<vmem>>, vector<8x128xf32>,
    } else {
    }
    return
  }
  func.func @transform_0(%arg0: i32, %arg1: i32) -> (i32, i32, i32) {
    %c0_i32 = arith.constant 0 : i32
    %c0_i32_0 = arith.constant 0 : i32
    return %arg1, %arg0, %c0_i32 : i32, i32, i32
  }
  func.func @transform_1(%arg0: i32, %arg1: i32) -> (i32, i32) {
    %c0_i32 = arith.constant 0 : i32
    %c0_i32_0 = arith.constant 0 : i32
    %c0_i32_1 = arith.constant 0 : i32
    return %c0_i32, %c0_i32_0 : i32, i32
  }
  func.func @transform_2(%arg0: i32, %arg1: i32) -> (i32, i32) {
    %c0_i32 = arith.constant 0 : i32
    %c0_i32_0 = arith.constant 0 : i32
    %c0_i32_1 = arith.constant 0 : i32
    return %c0_i32, %c0_i32_0 : i32, i32
  }
  func.func @transform_3(%arg0: i32, %arg1: i32) -> (i32, i32) {
    %c0_i32 = arith.constant 0 : i32
    %c0_i32_0 = arith.constant 0 : i32
    %c0_i32_1 = arith.constant 0 : i32
    return %c0_i32, %c0_i32_0 : i32, i32
  }
  func.func @transform_4(%arg0: i32, %arg1: i32) -> (i32, i32) {
    %c0_i32 = arith.constant 0 : i32
    %c0_i32_0 = arith.constant 0 : i32
    %c0_i32_1 = arith.constant 0 : i32
    return %c0_i32, %c0_i32_0 : i32, i32
  }
  func.func @transform_5(%arg0: i32, %arg1: i32) -> (i32, i32) {
    %c0_i32 = arith.constant 0 : i32
    %c0_i32_0 = arith.constant 0 : i32
    %c0_i32_1 = arith.constant 0 : i32
    return %c0_i32, %c0_i32_0 : i32, i32
  }
  func.func @transform_6(%arg0: i32, %arg1: i32) -> (i32, i32) {
    %c0_i32 = arith.constant 0 : i32
    %c0_i32_0 = arith.constant 0 : i32
    %c0_i32_1 = arith.constant 0 : i32
    return %c0_i32, %c0_i32_0 : i32, i32
  }
  func.func @transform_7(%arg0: i32, %arg1: i32) -> (i32, i32) {
    %c0_i32 = arith.constant 0 : i32
    %c0_i32_0 = arith.constant 0 : i32
    %c0_i32_1 = arith.constant 0 : i32
    return %c0_i32, %c0_i32_0 : i32, i32
  }
  func.func @transform_8(%arg0: i32, %arg1: i32) -> (i32, i32) {
    %c0_i32 = arith.constant 0 : i32
    %c0_i32_0 = arith.constant 0 : i32
    %c0_i32_1 = arith.constant 0 : i32
    return %c0_i32, %c0_i32_0 : i32, i32
  }
  func.func @transform_9(%arg0: i32, %arg1: i32) -> (i32, i32) {
    %c0_i32 = arith.constant 0 : i32
    %c0_i32_0 = arith.constant 0 : i32
    %c0_i32_1 = arith.constant 0 : i32
    return %c0_i32, %c0_i32_0 : i32, i32
  }
  func.func @transform_10(%arg0: i32, %arg1: i32) -> (i32, i32) {
    %c0_i32 = arith.constant 0 : i32
    %c0_i32_0 = arith.constant 0 : i32
    %c0_i32_1 = arith.constant 0 : i32
    return %c0_i32, %c0_i32_0 : i32, i32
  }
  func.func @transform_11(%arg0: i32, %arg1: i32) -> (i32, i32) {
    %c0_i32 = arith.constant 0 : i32
    %c0_i32_0 = arith.constant 0 : i32
    return %arg0, %c0_i32 : i32, i32
  }
}

</mosaic_0001>

<bundles_post_ra>
// kernel: tpu_custom_call.1
= control target key start
LH: loop header
LB: loop body
LE: loop exit
PB: predicated region body
PF: predicated region fallthrough
CT: control target
= control target key end

     0   :  { %16 = vsyncpa [#allocation5], 0  ;;  %s2207_s0 = inlined_call_operand.hbm [shape: f32[8,8,32], index: 0, kind: input, shape index: {}]   ;;  %s2208_s1 = inlined_call_operand.hbm [shape: bf16[32,128], index: 1, kind: input, shape index: {}]   ;;  %s2209_s2 = inlined_call_operand.hbm [shape: bf16[128,128], index: 2, kind: input, shape index: {}]   ;;  %s2210_s3 = inlined_call_operand.vmem [shape: f32[1,128], index: 3, kind: input, shape index: {}]   ;;  %s2211_s4 = inlined_call_operand.vmem [shape: f32[1,128], index: 4, kind: input, shape index: {}]   ;;  %s2212_s5 = inlined_call_operand.hbm [shape: bf16[128,128], index: 5, kind: input, shape index: {}]   ;;  %s2213_s6 = inlined_call_operand.vmem [shape: f32[1,128], index: 6, kind: input, shape index: {}]   ;;  %s2214_s7 = inlined_call_operand.hbm [shape: bf16[128,128], index: 7, kind: input, shape index: {}]   ;;  %s2215_s8 = inlined_call_operand.vmem [shape: f32[1,128], index: 8, kind: input, shape index: {}]   ;;  %s2216_s9 = inlined_call_operand.hbm [shape: bf16[128,128], index: 9, kind: input, shape index: {}]   ;;  %s2217_s10 = inlined_call_operand.vmem [shape: f32[1,128], index: 10, kind: input, shape index: {}]   ;;  %s2218_s11 = inlined_call_operand.hbm [shape: f32[8,128], index: 11, kind: output, shape index: {}]  }
   0x1   :  { %17 = vsyncpa [#allocation8], 0 }
   0x2   :  { %18 = vsyncpa [#allocation11], 0 }
   0x3   :  { %19 = vsyncpa [#allocation14], 0 }
   0x4   :  { %20 = vsyncpa [#allocation6], 0  ;;  %s1848_s17 = smov [#allocation7]  }
   0x5   :  { %s38_s18 = sshll.u32 %s1848_s17, 4  ;;  %s39_s18 = int_to_ptr.vmem [resolvable:$true] %s38_s18 }
   0x6   :  { %s1706_s19 = scalar_lea.vmem %s39_s18, 256  ;;  %p1711_p1 = scmp.lt.s32.totalorder %s39_s18, %s39_s18 }
   0x7   :  { %p1707_p0 = scmp.ne.s32.totalorder %s39_s18, %s1706_s19  ;;  %p1712_p2 = scmp.lt.s32.totalorder %s1706_s19, %s1706_s19 }
   0x9   :  { %p1713_p3 = por %p1712_p2, %p1711_p1 }
   0xb   :  { %p1714_p4 = pnand %p1713_p3, %p1707_p0 }
   0xd   :  { %1717 = shalt.err (!%p1714_p4)
}
   0xe   :  { %s1849_s20 = smov 64   ;;  %s1850_s21 = smov 4  }
   0xf   :  { %44 = dma.hbm_to_vmem [thread:$0]  %s2208_s1, 256, %s39_s18, [#allocation8], %s1849_s20, %s1849_s20, %s1850_s21  }
  0x10   :  { %s1851_s24 = smov [#allocation10]   ;;  %s1852_s26 = smov [#allocation4]  }
  0x11   :  { %s66_s25 = sshll.u32 %s1851_s24, 4  ;;  %s26_s27 = sshll.u32 %s1852_s26, 4  ;;  %s67_s25 = int_to_ptr.vmem [resolvable:$true] %s66_s25  ;;  %s27_s27 = int_to_ptr.vmem [resolvable:$true] %s26_s27 }
  0x12   :  { %s1726_s28 = scalar_lea.vmem %s67_s25, 1024  ;;  %p1731_p6 = scmp.lt.s32.totalorder %s67_s25, %s67_s25 }
  0x13   :  { %p1727_p5 = scmp.ne.s32.totalorder %s67_s25, %s1726_s28  ;;  %p1732_p7 = scmp.lt.s32.totalorder %s1726_s28, %s1726_s28 }
  0x15   :  { %p1733_p8 = por %p1732_p7, %p1731_p6 }
  0x17   :  { %p1734_p9 = pnand %p1733_p8, %p1727_p5 }
  0x19   :  { %1737 = shalt.err (!%p1734_p9)
}
  0x1a   :  { %72 = dma.hbm_to_vmem [thread:$0]  %s2212_s5, 1024, %s67_s25, [#allocation11], %s1849_s20, %s1849_s20, %s1850_s21  }
  0x1b   :  { %s1746_s1 = scalar_lea.vmem %s27_s27, 1024  ;;  %p1751_p11 = scmp.lt.s32.totalorder %s27_s27, %s27_s27 }
  0x1c   :  { %p1747_p10 = scmp.ne.s32.totalorder %s27_s27, %s1746_s1  ;;  %p1752_p12 = scmp.lt.s32.totalorder %s1746_s1, %s1746_s1 }
  0x1e   :  { %p1753_p13 = por %p1752_p12, %p1751_p11 }
  0x20   :  { %p1754_p0 = pnand %p1753_p13, %p1747_p10 }
  0x22   :  { %1757 = shalt.err (!%p1754_p0)
}
  0x23   :  { %s1853_s12 = smov 128   ;;  %s1854_s13 = smov 8  }
  0x24   :  { %32 = dma.hbm_to_vmem [thread:$0]  %s2207_s0, 1024, %s27_s27, [#allocation5], %s1853_s12, %s1853_s12, %s1854_s13  }
  0x25   :  { %s1855_s16 = smov [#allocation9]   ;;  %s1856_s18 = smov [#allocation12]  }
  0x26   :  { %s50_s17 = sshll.u32 %s1855_s16, 4  ;;  %s80_s19 = sshll.u32 %s1856_s18, 4  ;;  %s51_s17 = int_to_ptr.vmem [resolvable:$true] %s50_s17  ;;  %s81_s19 = int_to_ptr.vmem [resolvable:$true] %s80_s19 }
  0x27   :  { %s1766_s5 = scalar_lea.vmem %s51_s17, 1024  ;;  %p1771_p2 = scmp.lt.s32.totalorder %s51_s17, %s51_s17 }
  0x28   :  { %p1767_p1 = scmp.ne.s32.totalorder %s51_s17, %s1766_s5  ;;  %p1772_p3 = scmp.lt.s32.totalorder %s1766_s5, %s1766_s5 }
  0x2a   :  { %p1773_p4 = por %p1772_p3, %p1771_p2 }
  0x2c   :  { %p1774_p5 = pnand %p1773_p4, %p1767_p1 }
  0x2e   :  { %1777 = shalt.err (!%p1774_p5)
}
  0x2f   :  { %56 = dma.hbm_to_vmem [thread:$0]  %s2209_s2, 1024, %s51_s17, [#allocation8], %s1849_s20, %s1849_s20, %s1850_s21  }
  0x30   :  { %s1786_s0 = scalar_lea.vmem %s81_s19, 1024  ;;  %p1791_p7 = scmp.lt.s32.totalorder %s81_s19, %s81_s19 }
  0x31   :  { %p1787_p6 = scmp.ne.s32.totalorder %s81_s19, %s1786_s0  ;;  %p1792_p8 = scmp.lt.s32.totalorder %s1786_s0, %s1786_s0 }
  0x33   :  { %p1793_p9 = por %p1792_p8, %p1791_p7 }
  0x35   :  { %p1794_p10 = pnand %p1793_p9, %p1787_p6 }
  0x37   :  { %1797 = shalt.err (!%p1794_p10)
}
  0x38   :  { %86 = dma.hbm_to_vmem [thread:$0]  %s2214_s7, 1024, %s81_s19, [#allocation11], %s1849_s20, %s1849_s20, %s1850_s21  }
  0x39   :  { %s1857_s26 = smov [#allocation13]  }
  0x3a   :  { %s94_s27 = sshll.u32 %s1857_s26, 4  ;;  %s95_s27 = int_to_ptr.vmem [resolvable:$true] %s94_s27 }
  0x3b   :  { %s1806_s28 = scalar_lea.vmem %s95_s27, 1024  ;;  %p1811_p12 = scmp.lt.s32.totalorder %s95_s27, %s95_s27 }
  0x3c   :  { %p1807_p11 = scmp.ne.s32.totalorder %s95_s27, %s1806_s28  ;;  %p1812_p13 = scmp.lt.s32.totalorder %s1806_s28, %s1806_s28 }
  0x3e   :  { %p1813_p0 = por %p1812_p13, %p1811_p12 }
  0x40   :  { %p1814_p1 = pnand %p1813_p0, %p1807_p11 }
  0x42   :  { %1817 = shalt.err (!%p1814_p1)
}
  0x43   :  { %100 = dma.hbm_to_vmem [thread:$0]  %s2216_s9, 1024, %s95_s27, [#allocation14], %s1849_s20, %s1849_s20, %s1850_s21  }
  0x44   :  { %1838 = dma.done.wait [#allocation5], 1024  }
  0x45   :  { %1839 = vsyncadd [#allocation5], 4294966272 }
  0x46   :  { %1840 = dma.done.wait [#allocation8], 1280  }
  0x47   :  { %1841 = vsyncadd [#allocation8], 4294966016 }
  0x48   :  { %1842 = dma.done.wait [#allocation11], 2048  }
  0x49   :  { %1843 = vsyncadd [#allocation11], 4294965248 }
  0x4a   :  { %1844 = dma.done.wait [#allocation14], 1024  }
  0x4b   :  { %1845 = vsyncadd [#allocation14], 4294966272  ;;  %v1858_v0 = vmov 0.0   ;;  %vm1859_vm0 = vmmov 0   ;;  %v1616_v1 = vld [vmem:[#allocation7 + $0x8] sm:$0xff]   ;;  %v1618_v3 = vld [vmem:[#allocation7] sm:$0xff]  }
  0x4c   :  { %1381 = vmatprep.subr.bf16.mxu1 %v1858_v0  ;;  %1397 = vmatprep.mubr.msk.bf16.mxu1 %vm1859_vm0, %v1858_v0  ;;  %v1959_v2 = vld [vmem:[#allocation9 + $0x38] sm:$0xff]   ;;  %v1962_v4 = vld [vmem:[#allocation9 + $0x30] sm:$0xff]   ;;  %v129_v7 = vld [vmem:[#allocation4 + $0x10] sm:$0xff]  ;;  %vm162_vm1 = vcmask 261120   ;;  %v1860_v17 = vmov 0.0|0.0   ;;  %s1862_s14 = smov [#allocation15]  }
  0x4d   :  { %1369 = vmatprep.subr.bf16.mxu0 %v1616_v1  ;;  %1382 = vmatpush3.bf16.msra.mxu1 %v1959_v2  ;;  %v127_v5 = vld [vmem:[#allocation4] sm:$0xff]  ;;  %v128_v6 = vld [vmem:[#allocation4 + $0x8] sm:$0xff]  ;;  %v130_v9 = vld [vmem:[#allocation4 + $0x18] sm:$0xff] }
  0x4e   :  { %1370 = vmatpush3.bf16.msra.mxu0 %v1616_v1  ;;  %1383 = vmatprep.subr.bf16.mxu1 %v1858_v0  ;;  %v135_v8 = vpack.c.bf16 %v128_v6, %v127_v5  ;;  %v136_v10 = vpack.c.bf16 %v130_v9, %v129_v7  ;;  %v1966_v11 = vld [vmem:[#allocation9 + $0x28] sm:$0xff]   ;;  %v1973_v12 = vld [vmem:[#allocation9 + $0x20] sm:$0xff]   ;;  %v1978_v13 = vld [vmem:[#allocation9 + $0x18] sm:$0xff]  }
  0x4f   :  { %1371 = vmatprep.subr.bf16.mxu0 %v1618_v3  ;;  %v1984_v14 = vld [vmem:[#allocation9 + $0x10] sm:$0xff]   ;;  %v1990_v15 = vld [vmem:[#allocation9 + $0x8] sm:$0xff]   ;;  %v1997_v16 = vld [vmem:[#allocation9] sm:$0xff]  }
  0x50   :  { %1373 = vmatprep.mubr.msk.bf16.mxu0 %vm162_vm1, %v135_v8  ;;  %v1190_v19 = vld [vmem:[%s2210_s3] ss:$0 sm:$0xff]  ;;  %s1861_s3 = smov 32   ;;  %v132_v43 = vld [vmem:[#allocation4 + $0x28] sm:$0xff]  ;;  %v133_v44 = vld [vmem:[#allocation4 + $0x30] sm:$0xff] }
  0x51   :  { %1384 = vmatpush3.bf16.msra.mxu1 %v1962_v4  ;;  %v2034_v29 = vld [vmem:[%s2211_s4] ss:$0 sm:$0xff]  ;;  %v134_v46 = vld [vmem:[#allocation4 + $0x38] sm:$0xff] }
  0x52   :  { %1372 = vmatpush3.bf16.msra.mxu0 %v1618_v3  ;;  %1385 = vmatprep.subr.bf16.mxu1 %v1858_v0  ;;  %v131_v42 = vld [vmem:[#allocation4 + $0x20] sm:$0xff]  ;;  %v138_v47 = vpack.c.bf16 %v134_v46, %v133_v44 }
  0x53   :  { %1401 = vmatprep.subr.bf16.mxu0 %v1858_v0  ;;  %v137_v45 = vpack.c.bf16 %v132_v43, %v131_v42 }
  0x55   :  { %1374 = vmatmul.mubr.msk.bf16.vlgmr.msra.gmra.mxu0 %vm162_vm1, %v136_v10  ;;  %1386 = vmatpush3.bf16.msra.mxu1 %v1966_v11 }
  0x56   :  { %1402 = vmatpush3.bf16.msra.mxu0 %v1959_v2  ;;  %1387 = vmatprep.subr.bf16.mxu1 %v1858_v0 }
  0x57   :  { %1403 = vmatprep.subr.bf16.mxu0 %v1858_v0  ;;  %1377 = vmatprep.mubr.msk.bf16.mxu0 %vm162_vm1, %v137_v45 }
  0x59   :  { %1388 = vmatpush3.bf16.msra.mxu1 %v1973_v12 }
  0x5a   :  { %1404 = vmatpush3.bf16.msra.mxu0 %v1962_v4  ;;  %1389 = vmatprep.subr.bf16.mxu1 %v1858_v0 }
  0x5b   :  { %1405 = vmatprep.subr.bf16.mxu0 %v1858_v0 }
  0x5d   :  { %1390 = vmatpush3.bf16.msra.mxu1 %v1978_v13  ;;  %1378 = vmatmul.mubr.msk.bf16.gmra.mxu0 %vm162_vm1, %v138_v47 }
  0x5e   :  { %1406 = vmatpush3.bf16.msra.mxu0 %v1966_v11  ;;  %1391 = vmatprep.subr.bf16.mxu1 %v1858_v0 }
  0x5f   :  { %1407 = vmatprep.subr.bf16.mxu0 %v1858_v0  ;;  %1417 = vmatprep.mubr.msk.bf16.mxu0 %vm1859_vm0, %v1858_v0 }
  0x61   :  { %1392 = vmatpush3.bf16.msra.mxu1 %v1984_v14 }
  0x62   :  { %1408 = vmatpush3.bf16.msra.mxu0 %v1973_v12  ;;  %1393 = vmatprep.subr.bf16.mxu1 %v1858_v0 }
  0x63   :  { %1409 = vmatprep.subr.bf16.mxu0 %v1858_v0 }
  0x65   :  { %1394 = vmatpush3.bf16.msra.mxu1 %v1990_v15 }
  0x66   :  { %1410 = vmatpush3.bf16.msra.mxu0 %v1978_v13  ;;  %1395 = vmatprep.subr.bf16.mxu1 %v1858_v0 }
  0x67   :  { %1411 = vmatprep.subr.bf16.mxu0 %v1858_v0 }
  0x69   :  { %1396 = vmatpush3.bf16.msra.mxu1 %v1997_v16 }
  0x6a   :  { %1412 = vmatpush3.bf16.msra.mxu0 %v1984_v14  ;;  %1421 = vmatprep.subr.bf16.mxu1 %v1858_v0 }
  0x6b   :  { %1413 = vmatprep.subr.bf16.mxu0 %v1858_v0 }
  0x6c   :  { %1398 = vmatmul.mubr.bf16.vlgmr.msra.gmra.mxu1 %v1860_v17 }
  0x6d   :  { %1422 = vmatpush3.bf16.msra.mxu1 %v1959_v2  ;;  %1437 = vmatprep.mubr.msk.bf16.mxu1 %vm1859_vm0, %v1858_v0 }
  0x6e   :  { %1414 = vmatpush3.bf16.msra.mxu0 %v1990_v15  ;;  %1423 = vmatprep.subr.bf16.mxu1 %v1858_v0 }
  0x6f   :  { %1415 = vmatprep.subr.bf16.mxu0 %v1858_v0 }
  0x71   :  { %1424 = vmatpush3.bf16.msra.mxu1 %v1962_v4 }
  0x72   :  { %1416 = vmatpush3.bf16.msra.mxu0 %v1997_v16  ;;  %1425 = vmatprep.subr.bf16.mxu1 %v1858_v0 }
  0x73   :  { %1441 = vmatprep.subr.bf16.mxu0 %v1858_v0 }
  0x75   :  { %1426 = vmatpush3.bf16.msra.mxu1 %v1966_v11 }
  0x76   :  { %1427 = vmatprep.subr.bf16.mxu1 %v1858_v0 }
  0x79   :  { %1428 = vmatpush3.bf16.msra.mxu1 %v1973_v12 }
  0x7a   :  { %1429 = vmatprep.subr.bf16.mxu1 %v1858_v0 }
  0x7d   :  { %1430 = vmatpush3.bf16.msra.mxu1 %v1978_v13 }
  0x7e   :  { %1431 = vmatprep.subr.bf16.mxu1 %v1858_v0 }
  0x81   :  { %1432 = vmatpush3.bf16.msra.mxu1 %v1984_v14 }
  0x82   :  { %1433 = vmatprep.subr.bf16.mxu1 %v1858_v0 }
  0x85   :  { %1434 = vmatpush3.bf16.msra.mxu1 %v1990_v15 }
  0x86   :  { %1435 = vmatprep.subr.bf16.mxu1 %v1858_v0 }
  0x89   :  { %1436 = vmatpush3.bf16.msra.mxu1 %v1997_v16 }
  0x8a   :  { %1461 = vmatprep.subr.bf16.mxu1 %v1858_v0 }
 0x115   :  { %v1375_v18 = vpop.f32.mrf.mxu0 }
 0x116   :  { %v218_v21 = vadd.f32 %v1375_v18, %v1190_v19 }
 0x117   :  { %v209_v20 = vpop.f32.mrf.mxu0 }
 0x118   :  { %v210_v23 = vadd.f32 %v1190_v19, %v209_v20 }
 0x119   :  { %v1376_v22 = vpop.f32.mrf.mxu0 }
 0x11a   :  { %v221_v24 = vadd.f32 %v1376_v22, %v1190_v19 }
 0x11b   :  { %v212_v25 = vpop.f32.mrf.mxu0 }
 0x11c   :  { %v1249_v26 = vpack.c.bf16 %v221_v24, %v218_v21  ;;  %v213_v27 = vadd.f32 %v1190_v19, %v212_v25 }
 0x11d   :  { %v1379_v52 = vpop.f32.mrf.mxu0 }
 0x11e   :  { %1261 = vst [vmem:[#allocation3 + $0x8] sm:$0xff] %v1249_v26   ;;  %v1244_v28 = vpack.c.bf16 %v213_v27, %v210_v23  ;;  %v234_v54 = vadd.f32 %v1379_v52, %v1190_v19 }
 0x11f   :  { %v225_v53 = vpop.f32.mrf.mxu0 }
 0x120   :  { %1245 = vst [vmem:[#allocation3] sm:$0xff] %v1244_v28   ;;  %v226_v56 = vadd.f32 %v1190_v19, %v225_v53 }
 0x121   :  { %v1380_v55 = vpop.f32.mrf.mxu0 }
 0x122   :  { %v237_v57 = vadd.f32 %v1380_v55, %v1190_v19 }
 0x123   :  { %v228_v58 = vpop.f32.mrf.mxu0 }
 0x124   :  { %v1259_v59 = vpack.c.bf16 %v237_v57, %v234_v54  ;;  %v229_v60 = vadd.f32 %v1190_v19, %v228_v58 }
 0x126   :  { %1263 = vst [vmem:[#allocation3 + $0x18] sm:$0xff] %v1259_v59   ;;  %v1254_v61 = vpack.c.bf16 %v229_v60, %v226_v56 }
 0x127   :  { %v2036_v30 = vld [vmem:[#allocation3] sm:$0xff]  }
 0x128   :  { %v281_v32 = vunpack.c.l.bf16 %v2036_v30  ;;  %1262 = vst [vmem:[#allocation3 + $0x10] sm:$0xff] %v1254_v61   ;;  %v391_v8 = vunpack.c.h.bf16 %v2036_v30 }
 0x12c   :  { %v365_v31 = vpop.f32.mrf.mxu1 }
 0x12d   :  { %v366_v33 = vadd.f32 %v2034_v29, %v365_v31 }
 0x12e   :  { %v1399_v34 = vpop.f32.mrf.mxu1 }
 0x12f   :  { %v371_v35 = vadd.f32 %v366_v33, %v281_v32 }
 0x130   :  { %v368_v36 = vpop.f32.mrf.mxu1 }
 0x131   :  { %v1206_v37 = vmul.f32 -1.442695, %v371_v35  ;;  %v452_v35 = vld [vmem:[#allocation3 + $0x8] sm:$0xff]  }
 0x132   :  { %v1400_v38 = vpop.f32.mrf.mxu1  ;;  %v515_v58 = vunpack.c.h.bf16 %v452_v35 }
 0x133   :  { %1650 = vpow2.f32 %v1206_v37  ;;  %v453_v37 = vunpack.c.l.bf16 %v452_v35 }
 0x140   :  { %v1651_v39 = vpop.eup %1650 }
 0x141   :  { %v375_v40 = vadd.f32 1.0, %v1651_v39 }
 0x143   :  { %1652 = vrcp.f32 %v375_v40 }
 0x150   :  { %v1653_v41 = vpop.eup %1652 }
 0x151   :  { %378 = vrot.lane.b32.xlu0 %v1653_v41, %s1861_s3  ;;  %v385_v62 = vsub.f32 1.0, %v1653_v41  ;;  %v387_v3 = vmul.f32 0.0, %v1653_v41 }
 0x1c3   :  { %v379_v48 = vpop.permute.xlu0 %378 }
 0x1c4   :  { %v380_v49 = vmul.f32 %v379_v48, %v366_v33 }
 0x1c6   :  { %v381_v50 = vadd.f32 %v380_v49, %v281_v32 }
 0x1c8   :  { %1654 = vtanh.f32 %v381_v50 }
 0x1d5   :  { %v1655_v51 = vpop.eup %1654 }
 0x1d6   :  { %383 = vrot.lane.b32.xlu0 %v1655_v51, %s1849_s20 }
 0x248   :  { %v384_v63 = vpop.permute.xlu0 %383 }
 0x249   :  { %v386_v1 = vmul.f32 %v385_v62, %v384_v63 }
 0x24b   :  { %v388_v5 = vadd.f32 %v387_v3, %v386_v1 }
 0x24d   :  { %v392_v6 = vpack.c.bf16 %v388_v5, %v388_v5 }
 0x24f   :  { %1418 = vmatmul.mubr.bf16.vlgmr.msra.gmra.mxu0 %v392_v6 }
 0x250   :  { %1442 = vmatpush3.bf16.msra.mxu0 %v1959_v2  ;;  %1457 = vmatprep.mubr.msk.bf16.mxu0 %vm1859_vm0, %v1858_v0 }
 0x251   :  { %1443 = vmatprep.subr.bf16.mxu0 %v1858_v0 }
 0x254   :  { %1444 = vmatpush3.bf16.msra.mxu0 %v1962_v4 }
 0x255   :  { %1445 = vmatprep.subr.bf16.mxu0 %v1858_v0 }
 0x258   :  { %1446 = vmatpush3.bf16.msra.mxu0 %v1966_v11 }
 0x259   :  { %1447 = vmatprep.subr.bf16.mxu0 %v1858_v0 }
 0x25c   :  { %1448 = vmatpush3.bf16.msra.mxu0 %v1973_v12 }
 0x25d   :  { %1449 = vmatprep.subr.bf16.mxu0 %v1858_v0 }
 0x260   :  { %1450 = vmatpush3.bf16.msra.mxu0 %v1978_v13 }
 0x261   :  { %1451 = vmatprep.subr.bf16.mxu0 %v1858_v0 }
 0x264   :  { %1452 = vmatpush3.bf16.msra.mxu0 %v1984_v14 }
 0x265   :  { %1453 = vmatprep.subr.bf16.mxu0 %v1858_v0 }
 0x268   :  { %1454 = vmatpush3.bf16.msra.mxu0 %v1990_v15 }
 0x269   :  { %1455 = vmatprep.subr.bf16.mxu0 %v1858_v0 }
 0x26c   :  { %1456 = vmatpush3.bf16.msra.mxu0 %v1997_v16 }
 0x26d   :  { %1481 = vmatprep.subr.bf16.mxu0 %v1858_v0 }
 0x30f   :  { %v427_v7 = vpop.f32.mrf.mxu0 }
 0x310   :  { %v428_v9 = vadd.f32 %v2034_v29, %v427_v7 }
 0x311   :  { %v1419_v10 = vpop.f32.mrf.mxu0 }
 0x312   :  { %v433_v17 = vadd.f32 %v428_v9, %v391_v8 }
 0x313   :  { %v430_v18 = vpop.f32.mrf.mxu0 }
 0x314   :  { %v1207_v19 = vmul.f32 -1.442695, %v433_v17 }
 0x315   :  { %v1420_v20 = vpop.f32.mrf.mxu0 }
 0x316   :  { %1656 = vpow2.f32 %v1207_v19 }
 0x323   :  { %v1657_v21 = vpop.eup %1656 }
 0x324   :  { %v437_v22 = vadd.f32 1.0, %v1657_v21 }
 0x326   :  { %1658 = vrcp.f32 %v437_v22 }
 0x333   :  { %v1659_v23 = vpop.eup %1658 }
 0x334   :  { %440 = vrot.lane.b32.xlu1 %v1659_v23, %s1861_s3  ;;  %v447_v28 = vsub.f32 1.0, %v1659_v23  ;;  %v449_v32 = vmul.f32 %v1659_v23, %v388_v5  ;;  %v576_v23 = vld [vmem:[#allocation3 + $0x10] sm:$0xff]  }
 0x3a6   :  { %v441_v24 = vpop.permute.xlu1 %440 }
 0x3a7   :  { %v442_v25 = vmul.f32 %v441_v24, %v428_v9 }
 0x3a9   :  { %v443_v26 = vadd.f32 %v442_v25, %v391_v8  ;;  %v577_v25 = vunpack.c.l.bf16 %v576_v23 }
 0x3ab   :  { %1660 = vtanh.f32 %v443_v26 }
 0x3b8   :  { %v1661_v27 = vpop.eup %1660 }
 0x3b9   :  { %445 = vrot.lane.b32.xlu1 %v1661_v27, %s1849_s20 }
 0x42b   :  { %v446_v30 = vpop.permute.xlu1 %445 }
 0x42c   :  { %v448_v31 = vmul.f32 %v447_v28, %v446_v30 }
 0x42e   :  { %v450_v33 = vadd.f32 %v449_v32, %v448_v31 }
 0x430   :  { %v454_v34 = vpack.c.bf16 %v450_v33, %v450_v33 }
 0x432   :  { %1438 = vmatmul.mubr.bf16.vlgmr.msra.gmra.mxu1 %v454_v34 }
 0x433   :  { %1462 = vmatpush3.bf16.msra.mxu1 %v1959_v2  ;;  %1477 = vmatprep.mubr.msk.bf16.mxu1 %vm1859_vm0, %v1858_v0 }
 0x434   :  { %1463 = vmatprep.subr.bf16.mxu1 %v1858_v0 }
 0x437   :  { %1464 = vmatpush3.bf16.msra.mxu1 %v1962_v4 }
 0x438   :  { %1465 = vmatprep.subr.bf16.mxu1 %v1858_v0 }
 0x43b   :  { %1466 = vmatpush3.bf16.msra.mxu1 %v1966_v11 }
 0x43c   :  { %1467 = vmatprep.subr.bf16.mxu1 %v1858_v0 }
 0x43f   :  { %1468 = vmatpush3.bf16.msra.mxu1 %v1973_v12 }
 0x440   :  { %1469 = vmatprep.subr.bf16.mxu1 %v1858_v0 }
 0x443   :  { %1470 = vmatpush3.bf16.msra.mxu1 %v1978_v13 }
 0x444   :  { %1471 = vmatprep.subr.bf16.mxu1 %v1858_v0 }
 0x447   :  { %1472 = vmatpush3.bf16.msra.mxu1 %v1984_v14 }
 0x448   :  { %1473 = vmatprep.subr.bf16.mxu1 %v1858_v0 }
 0x44b   :  { %1474 = vmatpush3.bf16.msra.mxu1 %v1990_v15 }
 0x44c   :  { %1475 = vmatprep.subr.bf16.mxu1 %v1858_v0 }
 0x44f   :  { %1476 = vmatpush3.bf16.msra.mxu1 %v1997_v16 }
 0x450   :  { %1501 = vmatprep.subr.bf16.mxu1 %v1858_v0 }
 0x4f2   :  { %v489_v36 = vpop.f32.mrf.mxu1 }
 0x4f3   :  { %v490_v38 = vadd.f32 %v2034_v29, %v489_v36 }
 0x4f4   :  { %v1439_v39 = vpop.f32.mrf.mxu1 }
 0x4f5   :  { %v495_v40 = vadd.f32 %v490_v38, %v453_v37 }
 0x4f6   :  { %v492_v41 = vpop.f32.mrf.mxu1 }
 0x4f7   :  { %v1208_v42 = vmul.f32 -1.442695, %v495_v40 }
 0x4f8   :  { %v1440_v43 = vpop.f32.mrf.mxu1 }
 0x4f9   :  { %1662 = vpow2.f32 %v1208_v42 }
 0x506   :  { %v1663_v44 = vpop.eup %1662 }
 0x507   :  { %v499_v45 = vadd.f32 1.0, %v1663_v44 }
 0x509   :  { %1664 = vrcp.f32 %v499_v45 }
 0x516   :  { %v1665_v46 = vpop.eup %1664 }
 0x517   :  { %502 = vrot.lane.b32.xlu0 %v1665_v46, %s1861_s3  ;;  %v509_v51 = vsub.f32 1.0, %v1665_v46  ;;  %v511_v54 = vmul.f32 %v1665_v46, %v450_v33 }
 0x589   :  { %v503_v47 = vpop.permute.xlu0 %502 }
 0x58a   :  { %v504_v48 = vmul.f32 %v503_v47, %v490_v38 }
 0x58c   :  { %v505_v49 = vadd.f32 %v504_v48, %v453_v37 }
 0x58e   :  { %1666 = vtanh.f32 %v505_v49 }
 0x59b   :  { %v1667_v50 = vpop.eup %1666 }
 0x59c   :  { %507 = vrot.lane.b32.xlu1 %v1667_v50, %s1849_s20 }
 0x60e   :  { %v508_v52 = vpop.permute.xlu1 %507 }
 0x60f   :  { %v510_v53 = vmul.f32 %v509_v51, %v508_v52 }
 0x611   :  { %v512_v55 = vadd.f32 %v511_v54, %v510_v53 }
 0x613   :  { %v516_v56 = vpack.c.bf16 %v512_v55, %v512_v55 }
 0x615   :  { %1458 = vmatmul.mubr.bf16.vlgmr.msra.gmra.mxu0 %v516_v56 }
 0x616   :  { %1482 = vmatpush3.bf16.msra.mxu0 %v1959_v2  ;;  %1497 = vmatprep.mubr.msk.bf16.mxu0 %vm1859_vm0, %v1858_v0 }
 0x617   :  { %1483 = vmatprep.subr.bf16.mxu0 %v1858_v0 }
 0x61a   :  { %1484 = vmatpush3.bf16.msra.mxu0 %v1962_v4 }
 0x61b   :  { %1485 = vmatprep.subr.bf16.mxu0 %v1858_v0 }
 0x61e   :  { %1486 = vmatpush3.bf16.msra.mxu0 %v1966_v11 }
 0x61f   :  { %1487 = vmatprep.subr.bf16.mxu0 %v1858_v0 }
 0x622   :  { %1488 = vmatpush3.bf16.msra.mxu0 %v1973_v12 }
 0x623   :  { %1489 = vmatprep.subr.bf16.mxu0 %v1858_v0 }
 0x626   :  { %1490 = vmatpush3.bf16.msra.mxu0 %v1978_v13 }
 0x627   :  { %1491 = vmatprep.subr.bf16.mxu0 %v1858_v0 }
 0x62a   :  { %1492 = vmatpush3.bf16.msra.mxu0 %v1984_v14 }
 0x62b   :  { %1493 = vmatprep.subr.bf16.mxu0 %v1858_v0 }
 0x62e   :  { %1494 = vmatpush3.bf16.msra.mxu0 %v1990_v15 }
 0x62f   :  { %1495 = vmatprep.subr.bf16.mxu0 %v1858_v0 }
 0x632   :  { %1496 = vmatpush3.bf16.msra.mxu0 %v1997_v16 }
 0x633   :  { %1521 = vmatprep.subr.bf16.mxu0 %v1858_v0 }
 0x6d5   :  { %v551_v57 = vpop.f32.mrf.mxu0 }
 0x6d6   :  { %v552_v59 = vadd.f32 %v2034_v29, %v551_v57 }
 0x6d7   :  { %v1459_v60 = vpop.f32.mrf.mxu0 }
 0x6d8   :  { %v557_v61 = vadd.f32 %v552_v59, %v515_v58 }
 0x6d9   :  { %v554_v62 = vpop.f32.mrf.mxu0 }
 0x6da   :  { %v1209_v63 = vmul.f32 -1.442695, %v557_v61 }
 0x6db   :  { %v1460_v1 = vpop.f32.mrf.mxu0 }
 0x6dc   :  { %1668 = vpow2.f32 %v1209_v63 }
 0x6e9   :  { %v1669_v3 = vpop.eup %1668 }
 0x6ea   :  { %v561_v5 = vadd.f32 1.0, %v1669_v3 }
 0x6ec   :  { %1670 = vrcp.f32 %v561_v5 }
 0x6f9   :  { %v1671_v6 = vpop.eup %1670 }
 0x6fa   :  { %564 = vrot.lane.b32.xlu0 %v1671_v6, %s1861_s3  ;;  %v571_v17 = vsub.f32 1.0, %v1671_v6  ;;  %v573_v20 = vmul.f32 %v1671_v6, %v512_v55 }
 0x76c   :  { %v565_v7 = vpop.permute.xlu0 %564 }
 0x76d   :  { %v566_v8 = vmul.f32 %v565_v7, %v552_v59  ;;  %v2154_v59 = vld [vmem:[#allocation3 + $0x18] sm:$0xff]  }
 0x76e   :  { %v701_v61 = vunpack.c.l.bf16 %v2154_v59 }
 0x76f   :  { %v567_v9 = vadd.f32 %v566_v8, %v515_v58 }
 0x771   :  { %1672 = vtanh.f32 %v567_v9 }
 0x77e   :  { %v1673_v10 = vpop.eup %1672 }
 0x77f   :  { %569 = vrot.lane.b32.xlu1 %v1673_v10, %s1849_s20 }
 0x7f1   :  { %v570_v18 = vpop.permute.xlu1 %569 }
 0x7f2   :  { %v572_v19 = vmul.f32 %v571_v17, %v570_v18 }
 0x7f4   :  { %v574_v21 = vadd.f32 %v573_v20, %v572_v19 }
 0x7f6   :  { %v578_v22 = vpack.c.bf16 %v574_v21, %v574_v21 }
 0x7f8   :  { %1478 = vmatmul.mubr.bf16.vlgmr.msra.gmra.mxu1 %v578_v22 }
 0x7f9   :  { %1502 = vmatpush3.bf16.msra.mxu1 %v1959_v2  ;;  %1517 = vmatprep.mubr.msk.bf16.mxu1 %vm1859_vm0, %v1858_v0 }
 0x7fa   :  { %1503 = vmatprep.subr.bf16.mxu1 %v1858_v0 }
 0x7fd   :  { %1504 = vmatpush3.bf16.msra.mxu1 %v1962_v4 }
 0x7fe   :  { %1505 = vmatprep.subr.bf16.mxu1 %v1858_v0 }
 0x801   :  { %1506 = vmatpush3.bf16.msra.mxu1 %v1966_v11 }
 0x802   :  { %1507 = vmatprep.subr.bf16.mxu1 %v1858_v0 }
 0x805   :  { %1508 = vmatpush3.bf16.msra.mxu1 %v1973_v12 }
 0x806   :  { %1509 = vmatprep.subr.bf16.mxu1 %v1858_v0 }
 0x809   :  { %1510 = vmatpush3.bf16.msra.mxu1 %v1978_v13 }
 0x80a   :  { %1511 = vmatprep.subr.bf16.mxu1 %v1858_v0 }
 0x80d   :  { %1512 = vmatpush3.bf16.msra.mxu1 %v1984_v14 }
 0x80e   :  { %1513 = vmatprep.subr.bf16.mxu1 %v1858_v0 }
 0x811   :  { %1514 = vmatpush3.bf16.msra.mxu1 %v1990_v15 }
 0x812   :  { %1515 = vmatprep.subr.bf16.mxu1 %v1858_v0 }
 0x815   :  { %1516 = vmatpush3.bf16.msra.mxu1 %v1997_v16 }
 0x816   :  { %1541 = vmatprep.subr.bf16.mxu1 %v1858_v0 }
 0x8b8   :  { %v613_v24 = vpop.f32.mrf.mxu1 }
 0x8b9   :  { %v614_v26 = vadd.f32 %v2034_v29, %v613_v24 }
 0x8ba   :  { %v1479_v27 = vpop.f32.mrf.mxu1 }
 0x8bb   :  { %v619_v28 = vadd.f32 %v614_v26, %v577_v25  ;;  %v763_v27 = vunpack.c.h.bf16 %v2154_v59  ;;  %v1646_v59 = vld [vmem:[#allocation13 + $0x18] sm:$0xff]  }
 0x8bc   :  { %v616_v30 = vpop.f32.mrf.mxu1 }
 0x8bd   :  { %v1210_v31 = vmul.f32 -1.442695, %v619_v28 }
 0x8be   :  { %v1480_v32 = vpop.f32.mrf.mxu1 }
 0x8bf   :  { %1674 = vpow2.f32 %v1210_v31 }
 0x8cc   :  { %v1675_v33 = vpop.eup %1674 }
 0x8cd   :  { %v623_v34 = vadd.f32 1.0, %v1675_v33 }
 0x8cf   :  { %1676 = vrcp.f32 %v623_v34 }
 0x8dc   :  { %v1677_v35 = vpop.eup %1676 }
 0x8dd   :  { %626 = vrot.lane.b32.xlu0 %v1677_v35, %s1861_s3  ;;  %v633_v40 = vsub.f32 1.0, %v1677_v35  ;;  %v635_v43 = vmul.f32 %v1677_v35, %v574_v21 }
 0x94f   :  { %v627_v36 = vpop.permute.xlu0 %626 }
 0x950   :  { %v628_v37 = vmul.f32 %v627_v36, %v614_v26 }
 0x952   :  { %v629_v38 = vadd.f32 %v628_v37, %v577_v25 }
 0x954   :  { %1678 = vtanh.f32 %v629_v38  ;;  %v1626_v38 = vld [vmem:[#allocation10 + $0x38] sm:$0xff]  }
 0x961   :  { %v1679_v39 = vpop.eup %1678 }
 0x962   :  { %631 = vrot.lane.b32.xlu1 %v1679_v39, %s1849_s20  ;;  %v1627_v39 = vld [vmem:[#allocation10 + $0x30] sm:$0xff]  }
 0x9d4   :  { %v632_v41 = vpop.permute.xlu1 %631 }
 0x9d5   :  { %v634_v42 = vmul.f32 %v633_v40, %v632_v41  ;;  %v1628_v40 = vld [vmem:[#allocation10 + $0x28] sm:$0xff]   ;;  %v1630_v41 = vld [vmem:[#allocation10 + $0x18] sm:$0xff]  }
 0x9d7   :  { %v636_v44 = vadd.f32 %v635_v43, %v634_v42  ;;  %v1631_v42 = vld [vmem:[#allocation10 + $0x10] sm:$0xff]   ;;  %v1632_v43 = vld [vmem:[#allocation10 + $0x8] sm:$0xff]  }
 0x9d9   :  { %v640_v45 = vpack.c.bf16 %v636_v44, %v636_v44 }
 0x9db   :  { %1498 = vmatmul.mubr.bf16.vlgmr.msra.gmra.mxu0 %v640_v45 }
 0x9dc   :  { %1522 = vmatpush3.bf16.msra.mxu0 %v1959_v2  ;;  %1537 = vmatprep.mubr.msk.bf16.mxu0 %vm1859_vm0, %v1858_v0 }
 0x9dd   :  { %1523 = vmatprep.subr.bf16.mxu0 %v1858_v0 }
 0x9e0   :  { %1524 = vmatpush3.bf16.msra.mxu0 %v1962_v4  ;;  %v639_v4 = vunpack.c.h.bf16 %v576_v23 }
 0x9e1   :  { %1525 = vmatprep.subr.bf16.mxu0 %v1858_v0 }
 0x9e4   :  { %1526 = vmatpush3.bf16.msra.mxu0 %v1966_v11 }
 0x9e5   :  { %1527 = vmatprep.subr.bf16.mxu0 %v1858_v0 }
 0x9e8   :  { %1528 = vmatpush3.bf16.msra.mxu0 %v1973_v12 }
 0x9e9   :  { %1529 = vmatprep.subr.bf16.mxu0 %v1858_v0 }
 0x9ec   :  { %1530 = vmatpush3.bf16.msra.mxu0 %v1978_v13 }
 0x9ed   :  { %1531 = vmatprep.subr.bf16.mxu0 %v1858_v0 }
 0x9f0   :  { %1532 = vmatpush3.bf16.msra.mxu0 %v1984_v14 }
 0x9f1   :  { %1533 = vmatprep.subr.bf16.mxu0 %v1858_v0 }
 0x9f4   :  { %1534 = vmatpush3.bf16.msra.mxu0 %v1990_v15 }
 0x9f5   :  { %1535 = vmatprep.subr.bf16.mxu0 %v1858_v0 }
 0x9f8   :  { %1536 = vmatpush3.bf16.msra.mxu0 %v1997_v16 }
 0x9f9   :  { %1561 = vmatprep.subr.bf16.mxu0 %v1858_v0 }
 0xa9b   :  { %v675_v2 = vpop.f32.mrf.mxu0 }
 0xa9c   :  { %v676_v11 = vadd.f32 %v2034_v29, %v675_v2 }
 0xa9d   :  { %v1499_v12 = vpop.f32.mrf.mxu0 }
 0xa9e   :  { %v681_v13 = vadd.f32 %v676_v11, %v639_v4  ;;  %v1635_v12 = vld [vmem:[#allocation12 + $0x30] sm:$0xff]  }
 0xa9f   :  { %v678_v46 = vpop.f32.mrf.mxu0 }
 0xaa0   :  { %v1211_v47 = vmul.f32 -1.442695, %v681_v13  ;;  %v1636_v46 = vld [vmem:[#allocation12 + $0x28] sm:$0xff]  }
 0xaa1   :  { %v1500_v48 = vpop.f32.mrf.mxu0 }
 0xaa2   :  { %1680 = vpow2.f32 %v1211_v47  ;;  %v1637_v47 = vld [vmem:[#allocation12 + $0x20] sm:$0xff]   ;;  %v1638_v48 = vld [vmem:[#allocation12 + $0x18] sm:$0xff]  }
 0xaaf   :  { %v1681_v14 = vpop.eup %1680 }
 0xab0   :  { %v685_v49 = vadd.f32 1.0, %v1681_v14  ;;  %v1639_v14 = vld [vmem:[#allocation12 + $0x10] sm:$0xff]  }
 0xab2   :  { %1682 = vrcp.f32 %v685_v49 }
 0xabf   :  { %v1683_v15 = vpop.eup %1682 }
 0xac0   :  { %688 = vrot.lane.b32.xlu0 %v1683_v15, %s1861_s3  ;;  %v695_v53 = vsub.f32 1.0, %v1683_v15  ;;  %v697_v56 = vmul.f32 %v1683_v15, %v636_v44 }
 0xb32   :  { %v689_v50 = vpop.permute.xlu0 %688 }
 0xb33   :  { %v690_v16 = vmul.f32 %v689_v50, %v676_v11  ;;  %v1634_v11 = vld [vmem:[#allocation12 + $0x38] sm:$0xff]  }
 0xb35   :  { %v691_v51 = vadd.f32 %v690_v16, %v639_v4  ;;  %v1633_v4 = vld [vmem:[#allocation10] sm:$0xff]  }
 0xb37   :  { %1684 = vtanh.f32 %v691_v51 }
 0xb44   :  { %v1685_v52 = vpop.eup %1684 }
 0xb45   :  { %693 = vrot.lane.b32.xlu1 %v1685_v52, %s1849_s20 }
 0xbb7   :  { %v694_v54 = vpop.permute.xlu1 %693 }
 0xbb8   :  { %v696_v55 = vmul.f32 %v695_v53, %v694_v54  ;;  %v1640_v53 = vld [vmem:[#allocation12 + $0x8] sm:$0xff]   ;;  %v1641_v54 = vld [vmem:[#allocation12] sm:$0xff]  }
 0xbba   :  { %v698_v57 = vadd.f32 %v697_v56, %v696_v55  ;;  %v1642_v55 = vld [vmem:[#allocation13 + $0x38] sm:$0xff]   ;;  %v1643_v56 = vld [vmem:[#allocation13 + $0x30] sm:$0xff]  }
 0xbbc   :  { %v702_v58 = vpack.c.bf16 %v698_v57, %v698_v57 }
 0xbbe   :  { %1518 = vmatmul.mubr.bf16.vlgmr.msra.gmra.mxu1 %v702_v58  ;;  %v1645_v58 = vld [vmem:[#allocation13 + $0x20] sm:$0xff]  }
 0xbbf   :  { %1557 = vmatprep.mubr.msk.bf16.mxu1 %vm1859_vm0, %v1858_v0  ;;  %1542 = vmatpush3.bf16.msra.mxu1 %v1626_v38 }
 0xbc0   :  { %1543 = vmatprep.subr.bf16.mxu1 %v1858_v0 }
 0xbc3   :  { %1544 = vmatpush3.bf16.msra.mxu1 %v1627_v39 }
 0xbc4   :  { %1545 = vmatprep.subr.bf16.mxu1 %v1858_v0 }
 0xbc7   :  { %1546 = vmatpush3.bf16.msra.mxu1 %v1628_v40 }
 0xbc8   :  { %1547 = vmatprep.subr.bf16.mxu1 %v1858_v0 }
 0xc7e   :  { %v737_v60 = vpop.f32.mrf.mxu1 }
 0xc7f   :  { %v738_v62 = vadd.f32 %v2034_v29, %v737_v60  ;;  %v1647_v60 = vld [vmem:[#allocation13 + $0x10] sm:$0xff]  }
 0xc80   :  { %v1519_v63 = vpop.f32.mrf.mxu1 }
 0xc81   :  { %v743_v1 = vadd.f32 %v738_v62, %v701_v61 }
 0xc82   :  { %v740_v3 = vpop.f32.mrf.mxu1 }
 0xc83   :  { %v1212_v5 = vmul.f32 -1.442695, %v743_v1 }
 0xc84   :  { %v1520_v6 = vpop.f32.mrf.mxu1 }
 0xc85   :  { %1686 = vpow2.f32 %v1212_v5 }
 0xc92   :  { %v1687_v7 = vpop.eup %1686 }
 0xc93   :  { %v747_v8 = vadd.f32 1.0, %v1687_v7 }
 0xc95   :  { %1688 = vrcp.f32 %v747_v8  ;;  %v1648_v8 = vld [vmem:[#allocation13 + $0x8] sm:$0xff]  }
 0xca2   :  { %v1689_v9 = vpop.eup %1688 }
 0xca3   :  { %750 = vrot.lane.b32.xlu0 %v1689_v9, %s1861_s3  ;;  %v757_v20 = vsub.f32 1.0, %v1689_v9  ;;  %v759_v23 = vmul.f32 %v1689_v9, %v698_v57  ;;  %v1644_v57 = vld [vmem:[#allocation13 + $0x28] sm:$0xff]   ;;  %v1649_v9 = vld [vmem:[#allocation13] sm:$0xff]  }
 0xd15   :  { %v751_v10 = vpop.permute.xlu0 %750 }
 0xd16   :  { %v752_v17 = vmul.f32 %v751_v10, %v738_v62  ;;  %v1223_v10 = vld [vmem:[%s2215_s8] ss:$0 sm:$0xff]  ;;  %s1178_s8 = sshll.u32 %s1862_s14, 4  ;;  %s1179_s8 = int_to_ptr.vmem [resolvable:$true] %s1178_s8 }
 0xd17   :  { %s1818_s15 = scalar_lea.vmem %s1179_s8, 128  ;;  %p1823_p3 = scmp.lt.s32.totalorder %s1179_s8, %s1179_s8 }
 0xd18   :  { %v753_v18 = vadd.f32 %v752_v17, %v701_v61  ;;  %v1214_v61 = vld [vmem:[%s2213_s6] ss:$0 sm:$0xff]  ;;  %p1819_p2 = scmp.ne.s32.totalorder %s1179_s8, %s1818_s15  ;;  %p1824_p4 = scmp.lt.s32.totalorder %s1818_s15, %s1818_s15 }
 0xd1a   :  { %1690 = vtanh.f32 %v753_v18  ;;  %p1825_p5 = por %p1824_p4, %p1823_p3 }
 0xd1c   :  { %p1826_p6 = pnand %p1825_p5, %p1819_p2 }
 0xd27   :  { %v1691_v19 = vpop.eup %1690 }
 0xd28   :  { %755 = vrot.lane.b32.xlu1 %v1691_v19, %s1849_s20 }
 0xd9a   :  { %v756_v21 = vpop.permute.xlu1 %755 }
 0xd9b   :  { %v758_v22 = vmul.f32 %v757_v20, %v756_v21 }
 0xd9d   :  { %v2160_v24 = vadd.f32 %v759_v23, %v758_v22 }
 0xd9f   :  { %v764_v25 = vpack.c.bf16 %v2160_v24, %v2160_v24 }
 0xda1   :  { %1538 = vmatmul.mubr.bf16.vlgmr.msra.gmra.mxu0 %v764_v25  ;;  %v1232_v25 = vld [vmem:[%s2217_s10] ss:$0 sm:$0xff] }
 0xda2   :  { %1577 = vmatprep.mubr.msk.bf16.mxu0 %vm1859_vm0, %v1858_v0  ;;  %1562 = vmatpush3.bf16.msra.mxu0 %v1634_v11 }
 0xda3   :  { %1563 = vmatprep.subr.bf16.mxu0 %v1858_v0 }
 0xda6   :  { %1564 = vmatpush3.bf16.msra.mxu0 %v1635_v12 }
 0xda7   :  { %1565 = vmatprep.subr.bf16.mxu0 %v1858_v0 }
 0xdaa   :  { %1566 = vmatpush3.bf16.msra.mxu0 %v1636_v46 }
 0xdab   :  { %1567 = vmatprep.subr.bf16.mxu0 %v1858_v0 }
 0xdae   :  { %1568 = vmatpush3.bf16.msra.mxu0 %v1637_v47 }
 0xdaf   :  { %1569 = vmatprep.subr.bf16.mxu0 %v1858_v0 }
 0xdb2   :  { %1570 = vmatpush3.bf16.msra.mxu0 %v1638_v48 }
 0xdb3   :  { %1571 = vmatprep.subr.bf16.mxu0 %v1858_v0 }
 0xdb6   :  { %1572 = vmatpush3.bf16.msra.mxu0 %v1639_v14 }
 0xdb7   :  { %1573 = vmatprep.subr.bf16.mxu0 %v1858_v0 }
 0xdba   :  { %1574 = vmatpush3.bf16.msra.mxu0 %v1640_v53 }
 0xdbb   :  { %1575 = vmatprep.subr.bf16.mxu0 %v1858_v0 }
 0xdbe   :  { %1576 = vmatpush3.bf16.msra.mxu0 %v1641_v54 }
 0xe61   :  { %v799_v26 = vpop.f32.mrf.mxu0 }
 0xe62   :  { %v800_v28 = vadd.f32 %v2034_v29, %v799_v26  ;;  %v1629_v29 = vld [vmem:[#allocation10 + $0x20] sm:$0xff]  }
 0xe63   :  { %v1539_v30 = vpop.f32.mrf.mxu0  ;;  %1548 = vmatpush3.bf16.msra.mxu1 %v1629_v29 }
 0xe64   :  { %v805_v31 = vadd.f32 %v800_v28, %v763_v27  ;;  %1549 = vmatprep.subr.bf16.mxu1 %v1858_v0 }
 0xe65   :  { %v802_v32 = vpop.f32.mrf.mxu0 }
 0xe66   :  { %v1213_v33 = vmul.f32 -1.442695, %v805_v31 }
 0xe67   :  { %v1540_v34 = vpop.f32.mrf.mxu0  ;;  %1550 = vmatpush3.bf16.msra.mxu1 %v1630_v41 }
 0xe68   :  { %1692 = vpow2.f32 %v1213_v33  ;;  %1551 = vmatprep.subr.bf16.mxu1 %v1858_v0 }
 0xe6b   :  { %1552 = vmatpush3.bf16.msra.mxu1 %v1631_v42 }
 0xe6c   :  { %1553 = vmatprep.subr.bf16.mxu1 %v1858_v0 }
 0xe6f   :  { %1554 = vmatpush3.bf16.msra.mxu1 %v1632_v43 }
 0xe70   :  { %1555 = vmatprep.subr.bf16.mxu1 %v1858_v0 }
 0xe73   :  { %1556 = vmatpush3.bf16.msra.mxu1 %v1633_v4 }
 0xe74   :  { %1581 = vmatprep.subr.bf16.mxu1 %v1858_v0 }
 0xe75   :  { %v1693_v35 = vpop.eup %1692 }
 0xe76   :  { %v809_v36 = vadd.f32 1.0, %v1693_v35 }
 0xe78   :  { %1694 = vrcp.f32 %v809_v36 }
 0xe85   :  { %v1695_v37 = vpop.eup %1694 }
 0xe86   :  { %812 = vrot.lane.b32.xlu0 %v1695_v37, %s1861_s3  ;;  %v819_v49 = vsub.f32 1.0, %v1695_v37  ;;  %v821_v16 = vmul.f32 %v1695_v37, %v2160_v24  ;;  %v1165_v24 = vlaneseq }
 0xe88   :  { %v1166_v26 = vand.u32 127, %v1165_v24 }
 0xe8a   :  { %vm1167_vm2 = vcmp.eq.s32.totalorder %v1166_v26, 2 }
 0xef8   :  { %v813_v44 = vpop.permute.xlu0 %812 }
 0xef9   :  { %v814_v45 = vmul.f32 %v813_v44, %v800_v28 }
 0xefb   :  { %v815_v2 = vadd.f32 %v814_v45, %v763_v27 }
 0xefd   :  { %1696 = vtanh.f32 %v815_v2 }
 0xf0a   :  { %v1697_v13 = vpop.eup %1696 }
 0xf0b   :  { %817 = vrot.lane.b32.xlu1 %v1697_v13, %s1849_s20 }
 0xf7d   :  { %v818_v15 = vpop.permute.xlu1 %817 }
 0xf7e   :  { %v820_v50 = vmul.f32 %v819_v49, %v818_v15 }
 0xf80   :  { %v822_v51 = vadd.f32 %v821_v16, %v820_v50 }
 0xf82   :  { %v827_v52 = vpack.c.bf16 %v822_v51, %v822_v51 }
 0xf84   :  { %1558 = vmatmul.mubr.bf16.vlgmr.msra.gmra.mxu1 %v827_v52 }
 0xf85   :  { %1597 = vmatprep.mubr.msk.bf16.mxu1 %vm1859_vm0, %v1858_v0  ;;  %1582 = vmatpush3.bf16.msra.mxu1 %v1642_v55 }
 0xf86   :  { %1583 = vmatprep.subr.bf16.mxu1 %v1858_v0 }
 0xf89   :  { %1584 = vmatpush3.bf16.msra.mxu1 %v1643_v56 }
 0xf8a   :  { %1585 = vmatprep.subr.bf16.mxu1 %v1858_v0 }
 0xf8d   :  { %1586 = vmatpush3.bf16.msra.mxu1 %v1644_v57 }
 0xf8e   :  { %1587 = vmatprep.subr.bf16.mxu1 %v1858_v0 }
 0xf91   :  { %1588 = vmatpush3.bf16.msra.mxu1 %v1645_v58 }
 0xf92   :  { %1589 = vmatprep.subr.bf16.mxu1 %v1858_v0 }
 0xf95   :  { %1590 = vmatpush3.bf16.msra.mxu1 %v1646_v59 }
 0xf96   :  { %1591 = vmatprep.subr.bf16.mxu1 %v1858_v0 }
 0xf99   :  { %1592 = vmatpush3.bf16.msra.mxu1 %v1647_v60 }
 0xf9a   :  { %1593 = vmatprep.subr.bf16.mxu1 %v1858_v0 }
 0xf9d   :  { %1594 = vmatpush3.bf16.msra.mxu1 %v1648_v8 }
 0xf9e   :  { %1595 = vmatprep.subr.bf16.mxu1 %v1858_v0 }
 0xfa1   :  { %1596 = vmatpush3.bf16.msra.mxu1 %v1649_v9 }
0x1044   :  { %v933_v62 = vpop.f32.mrf.mxu1 }
0x1045   :  { %v934_v63 = vadd.f32 %v1214_v61, %v933_v62 }
0x1046   :  { %v1559_v1 = vpop.f32.mrf.mxu1 }
0x1047   :  { %v939_v3 = vmax.f32 %v934_v63, 0.0 }
0x1048   :  { %v936_v5 = vpop.f32.mrf.mxu1 }
0x1049   :  { %v940_v6 = vpack.c.bf16 %v939_v3, %v939_v3 }
0x104a   :  { %v1560_v7 = vpop.f32.mrf.mxu1 }
0x104b   :  { %1578 = vmatmul.mubr.bf16.vlgmr.msra.gmra.mxu0 %v940_v6 }
0x110b   :  { %v1046_v17 = vpop.f32.mrf.mxu0 }
0x110c   :  { %v1047_v18 = vadd.f32 %v1223_v10, %v1046_v17 }
0x110d   :  { %v1579_v19 = vpop.f32.mrf.mxu0 }
0x110e   :  { %v1052_v20 = vmax.f32 %v1047_v18, 0.0 }
0x110f   :  { %v1049_v21 = vpop.f32.mrf.mxu0 }
0x1110   :  { %v1053_v22 = vpack.c.bf16 %v1052_v20, %v1052_v20 }
0x1111   :  { %v1580_v23 = vpop.f32.mrf.mxu0 }
0x1112   :  { %1598 = vmatmul.mubr.bf16.vlgmr.msra.gmra.mxu1 %v1053_v22 }
0x11d2   :  { %v1159_v0 = vpop.f32.mrf.mxu1 }
0x11d3   :  { %v1160_v27 = vadd.f32 %v1232_v25, %v1159_v0 }
0x11d4   :  { %v1599_v28 = vpop.f32.mrf.mxu1 }
0x11d5   :  { %v1168_v30 = vmax.f32 %v1160_v27, 0.0 }
0x11d6   :  { %v1162_v31 = vpop.f32.mrf.mxu1 }
0x11d7   :  { %v1169_v32 = vadd.f32 1e-06, %v1168_v30 }
0x11d8   :  { %v1600_v33 = vpop.f32.mrf.mxu1 }
0x11d9   :  { %v1170_v34 = vsel %vm1167_vm2, %v1169_v32, %v1160_v27 }
0x11da   :  { %1171 = vst [vmem:[#allocation15] sm:$0xff] %v1170_v34 }
0x11db   :  { %1829 = shalt.err (!%p1826_p6)
}
0x11dc   :  { %1181 = dma.vmem_to_hbm [thread:$0]  %s1179_s8, 128, %s2218_s11, [#allocation6]  }
0x11dd   :  { %1846 = dma.done.wait [#allocation6], 128  }
0x11de   :  { %1847 = vsyncadd [#allocation6], 4294967168 }
0x11df   :  { %1185 = vsyncpa [#allocation5], 1 }
0x11e0   :  { %1186 = vsyncpa [#allocation8], 1 }
0x11e1   :  { %1187 = vsyncpa [#allocation11], 1 }
0x11e2   :  { %1188 = vsyncpa [#allocation14], 1 }
0x11e3   :  { %1189 = vsyncpa [#allocation6], 1 }

</bundles_post_ra>
